<compile_context>
chip_gen: v6e
topology: v6e:2x2x1
jax: 0.10.0
libtpu: 0.0.40
codegen_flags: <defaults>
</compile_context>

<pallas_src>
import functools

import jax
import jax.numpy as jnp
from jax import lax
from jax.experimental import pallas as pl
from jax.experimental.pallas import tpu as pltpu

LN_EPS = 1e-5


def _linear(h_bf16, w_ref, b_ref):
    # bf16 x bf16 -> f32 accumulate on the MXU, f32 bias add on the VPU.
    return jnp.dot(h_bf16, w_ref[...], preferred_element_type=jnp.float32) + b_ref[...]


def _layernorm(h, g_ref, b_ref):
    # Single-pass statistics: mu and E[h^2] in one sweep (fewer XLU reductions).
    mu = jnp.mean(h, axis=-1, keepdims=True)
    var = jnp.mean(h * h, axis=-1, keepdims=True) - mu * mu
    return (h - mu) * lax.rsqrt(var + LN_EPS) * g_ref[...] + b_ref[...]


def vae2_kernel(
    x_ref, eps_ref,
    # encoder
    w1e_ref, b1e_ref, g1e_ref, be1e_ref,
    w2e_ref, b2e_ref, g2e_ref, be2e_ref,
    wml_ref, bml_ref,                       # fused mean|logvar projection
    # decoder
    w1d_ref, b1d_ref, g1d_ref, be1d_ref,
    w2d_ref, b2d_ref, g2d_ref, be2d_ref,
    w3d_ref, b3d_ref,
    # outputs
    recon_ref, moments_ref,
    *, latent_dim,
):
    x = x_ref[...]  # already bf16

    # ---- Encoder ----
    h = jnp.maximum(_layernorm(_linear(x, w1e_ref, b1e_ref), g1e_ref, be1e_ref), 0.0)
    h = h.astype(jnp.bfloat16)
    h = jnp.maximum(_layernorm(_linear(h, w2e_ref, b2e_ref), g2e_ref, be2e_ref), 0.0)
    h = h.astype(jnp.bfloat16)
    # TODO(synk): Dropout(p=0.5) treated as identity (eval mode).

    # Fused mean|logvar projection: one N=2*latent matmul, lane-dense result.
    moments = _linear(h, wml_ref, bml_ref)          # [TB, 2*latent] f32
    mean = moments[:, :latent_dim]
    logvar = moments[:, latent_dim:]

    # ---- Reparameterize (f32) ----
    std = jnp.exp(0.5 * logvar)
    z = (mean + eps_ref[...] * std).astype(jnp.bfloat16)

    # ---- Decoder ----
    d = jnp.maximum(_layernorm(_linear(z, w1d_ref, b1d_ref), g1d_ref, be1d_ref), 0.0)
    d = d.astype(jnp.bfloat16)
    # TODO(synk): Dropout(p=0.8) treated as identity (eval mode).
    d = jnp.maximum(_layernorm(_linear(d, w2d_ref, b2d_ref), g2d_ref, be2d_ref), 0.0)
    d = d.astype(jnp.bfloat16)
    recon = _linear(d, w3d_ref, b3d_ref)

    recon_ref[...] = recon.astype(recon_ref.dtype)
    moments_ref[...] = moments.astype(moments_ref.dtype)


def _nbytes(a):
    return int(a.size) * jnp.dtype(a.dtype).itemsize


def vae2_forward(x, eps, params):
    """x: [B, input_dim] f32, eps: [B, latent_dim] f32, params: dict of f32 arrays.

    Returns (reconstructed_x, mean, logvar), all f32.
    """
    B, input_dim = x.shape
    latent_dim = eps.shape[1]
    output_dim = params["w3d"].shape[1]

    # Batch tile: fill the MXU M dim when B is large; single step for small B.
    TB = B if B <= 256 else 256
    grid = (pl.cdiv(B, TB),)

    bf16 = jnp.bfloat16
    # Fuse mean / logvar projections into a single weight / bias.
    wml = jnp.concatenate([params["wm"], params["wlv"]], axis=1).astype(bf16)
    bml = jnp.concatenate([params["bm"], params["blv"]], axis=1)

    ordered = [
        x.astype(bf16), eps,
        params["w1e"].astype(bf16), params["b1e"], params["g1e"], params["be1e"],
        params["w2e"].astype(bf16), params["b2e"], params["g2e"], params["be2e"],
        wml, bml,
        params["w1d"].astype(bf16), params["b1d"], params["g1d"], params["be1d"],
        params["w2d"].astype(bf16), params["b2d"], params["g2d"], params["be2d"],
        params["w3d"].astype(bf16), params["b3d"],
    ]

    def row_spec(ncols):
        return pl.BlockSpec((TB, ncols), lambda i: (i, 0))

    def pinned_spec(a):
        # Full-array block, constant index map -> weight stays VMEM-resident
        # across the batch grid (no re-fetch between steps).
        return pl.BlockSpec(a.shape, lambda i: (0, 0))

    in_specs = [row_spec(input_dim), row_spec(latent_dim)]
    in_specs += [pinned_spec(a) for a in ordered[2:]]

    out_specs = (row_spec(output_dim), row_spec(2 * latent_dim))
    out_shape = (
        jax.ShapeDtypeStruct((B, output_dim), jnp.float32),
        jax.ShapeDtypeStruct((B, 2 * latent_dim), jnp.float32),
    )

    # Right-sized VMEM request (weights x2 buffers + pipelined I/O tiles +
    # activation headroom), clamped safely under v7x's 64 MiB physical VMEM.
    param_bytes = 2 * sum(_nbytes(a) for a in ordered[2:])
    io_bytes = 2 * TB * (2 * input_dim + 4 * latent_dim
                         + 4 * output_dim + 8 * latent_dim)
    act_bytes = 8 * TB * 1024 * 4
    vmem_limit = param_bytes + io_bytes + act_bytes + (4 << 20)
    vmem_limit = int(min(max(vmem_limit, 16 << 20), 48 << 20))

    kernel = functools.partial(vae2_kernel, latent_dim=latent_dim)

    recon, moments = pl.pallas_call(
        kernel,
        out_shape=out_shape,
        grid=grid,
        in_specs=in_specs,
        out_specs=out_specs,
        compiler_params=pltpu.CompilerParams(
            dimension_semantics=("parallel",),
            vmem_limit_bytes=vmem_limit,
        ),
    )(*ordered)

    mean = moments[:, :latent_dim]
    logvar = moments[:, latent_dim:]
    return recon, mean, logvar


def init_params(key, input_dim, latent_dim, output_dim):
    """Deterministic synthetic parameters matching the torch module's shapes."""
    def lin(k, fan_in, fan_out):
        kw, kb = jax.random.split(k)
        bound = 1.0 / jnp.sqrt(fan_in)
        w = jax.random.uniform(kw, (fan_in, fan_out), jnp.float32, -bound, bound)
        b = jax.random.uniform(kb, (1, fan_out), jnp.float32, -bound, bound)
        return w, b

    keys = jax.random.split(key, 7)
    p = {}
    # Encoder
    p["w1e"], p["b1e"] = lin(keys[0], input_dim, 1024)
    p["g1e"] = jnp.ones((1, 1024), jnp.float32)
    p["be1e"] = jnp.zeros((1, 1024), jnp.float32)
    p["w2e"], p["b2e"] = lin(keys[1], 1024, 256)
    p["g2e"] = jnp.ones((1, 256), jnp.float32)
    p["be2e"] = jnp.zeros((1, 256), jnp.float32)
    p["wm"], p["bm"] = lin(keys[2], 256, latent_dim)
    p["wlv"], p["blv"] = lin(keys[3], 256, latent_dim)
    # Decoder
    p["w1d"], p["b1d"] = lin(keys[4], latent_dim, 256)
    p["g1d"] = jnp.ones((1, 256), jnp.float32)
    p["be1d"] = jnp.zeros((1, 256), jnp.float32)
    p["w2d"], p["b2d"] = lin(keys[5], 256, 1024)
    p["g2d"] = jnp.ones((1, 1024), jnp.float32)
    p["be2d"] = jnp.zeros((1, 1024), jnp.float32)
    p["w3d"], p["b3d"] = lin(keys[6], 1024, output_dim)
    return p


if __name__ == "__main__":
    B = 8
    input_dim = 64
    latent_dim = 32
    output_dim = 64

    key = jax.random.PRNGKey(0)
    k_x, k_eps, k_p = jax.random.split(key, 3)

    x = jax.random.normal(k_x, (B, input_dim), jnp.float32)
    eps = jax.random.normal(k_eps, (B, latent_dim), jnp.float32)
    params = init_params(k_p, input_dim, latent_dim, output_dim)

    recon, mean, logvar = vae2_forward(x, eps, params)
    jax.block_until_ready((recon, mean, logvar))

    assert recon.shape == (B, output_dim)
    assert mean.shape == (B, latent_dim)
    assert logvar.shape == (B, latent_dim)
    assert bool(jnp.all(jnp.isfinite(recon)))
    assert bool(jnp.all(jnp.isfinite(mean)))
    assert bool(jnp.all(jnp.isfinite(logvar)))
    print("KERNEL_OK")
</pallas_src>

<mosaic_0001>
module attributes {stable_mosaic.version = 11 : i64} {
  func.func @vae2_kernel(%arg0: i32, %arg1: memref<8x64xbf16, #tpu.memory_space<vmem>>, %arg2: memref<8x32xf32, #tpu.memory_space<vmem>>, %arg3: memref<64x1024xbf16, #tpu.memory_space<vmem>>, %arg4: memref<1x1024xf32, #tpu.memory_space<vmem>>, %arg5: memref<1x1024xf32, #tpu.memory_space<vmem>>, %arg6: memref<1x1024xf32, #tpu.memory_space<vmem>>, %arg7: memref<1024x256xbf16, #tpu.memory_space<vmem>>, %arg8: memref<1x256xf32, #tpu.memory_space<vmem>>, %arg9: memref<1x256xf32, #tpu.memory_space<vmem>>, %arg10: memref<1x256xf32, #tpu.memory_space<vmem>>, %arg11: memref<256x64xbf16, #tpu.memory_space<vmem>>, %arg12: memref<1x64xf32, #tpu.memory_space<vmem>>, %arg13: memref<32x256xbf16, #tpu.memory_space<vmem>>, %arg14: memref<1x256xf32, #tpu.memory_space<vmem>>, %arg15: memref<1x256xf32, #tpu.memory_space<vmem>>, %arg16: memref<1x256xf32, #tpu.memory_space<vmem>>, %arg17: memref<256x1024xbf16, #tpu.memory_space<vmem>>, %arg18: memref<1x1024xf32, #tpu.memory_space<vmem>>, %arg19: memref<1x1024xf32, #tpu.memory_space<vmem>>, %arg20: memref<1x1024xf32, #tpu.memory_space<vmem>>, %arg21: memref<1024x64xbf16, #tpu.memory_space<vmem>>, %arg22: memref<1x64xf32, #tpu.memory_space<vmem>>, %arg23: memref<8x64xf32, #tpu.memory_space<vmem>>, %arg24: memref<8x64xf32, #tpu.memory_space<vmem>>) attributes {dimension_semantics = [#tpu.dimension_semantics<parallel>], iteration_bounds = array<i64: 1>, scalar_prefetch = 0 : i64, scratch_operands = 0 : i64, tpu.core_type = #tpu.core_type<tc>, window_params = [{transform_indices = @transform_0, window_bounds = array<i64: 8, 64>}, {transform_indices = @transform_1, window_bounds = array<i64: 8, 32>}, {pipeline_mode = #tpu.pipeline_mode<synchronous>, transform_indices = @transform_2, window_bounds = array<i64: 64, 1024>}, {pipeline_mode = #tpu.pipeline_mode<synchronous>, transform_indices = @transform_3, window_bounds = array<i64: 1, 1024>}, {pipeline_mode = #tpu.pipeline_mode<synchronous>, transform_indices = @transform_4, window_bounds = array<i64: 1, 1024>}, {pipeline_mode = #tpu.pipeline_mode<synchronous>, transform_indices = @transform_5, window_bounds = array<i64: 1, 1024>}, {pipeline_mode = #tpu.pipeline_mode<synchronous>, transform_indices = @transform_6, window_bounds = array<i64: 1024, 256>}, {pipeline_mode = #tpu.pipeline_mode<synchronous>, transform_indices = @transform_7, window_bounds = array<i64: 1, 256>}, {pipeline_mode = #tpu.pipeline_mode<synchronous>, transform_indices = @transform_8, window_bounds = array<i64: 1, 256>}, {pipeline_mode = #tpu.pipeline_mode<synchronous>, transform_indices = @transform_9, window_bounds = array<i64: 1, 256>}, {pipeline_mode = #tpu.pipeline_mode<synchronous>, transform_indices = @transform_10, window_bounds = array<i64: 256, 64>}, {pipeline_mode = #tpu.pipeline_mode<synchronous>, transform_indices = @transform_11, window_bounds = array<i64: 1, 64>}, {pipeline_mode = #tpu.pipeline_mode<synchronous>, transform_indices = @transform_12, window_bounds = array<i64: 32, 256>}, {pipeline_mode = #tpu.pipeline_mode<synchronous>, transform_indices = @transform_13, window_bounds = array<i64: 1, 256>}, {pipeline_mode = #tpu.pipeline_mode<synchronous>, transform_indices = @transform_14, window_bounds = array<i64: 1, 256>}, {pipeline_mode = #tpu.pipeline_mode<synchronous>, transform_indices = @transform_15, window_bounds = array<i64: 1, 256>}, {pipeline_mode = #tpu.pipeline_mode<synchronous>, transform_indices = @transform_16, window_bounds = array<i64: 256, 1024>}, {pipeline_mode = #tpu.pipeline_mode<synchronous>, transform_indices = @transform_17, window_bounds = array<i64: 1, 1024>}, {pipeline_mode = #tpu.pipeline_mode<synchronous>, transform_indices = @transform_18, window_bounds = array<i64: 1, 1024>}, {pipeline_mode = #tpu.pipeline_mode<synchronous>, transform_indices = @transform_19, window_bounds = array<i64: 1, 1024>}, {pipeline_mode = #tpu.pipeline_mode<synchronous>, transform_indices = @transform_20, window_bounds = array<i64: 1024, 64>}, {pipeline_mode = #tpu.pipeline_mode<synchronous>, transform_indices = @transform_21, window_bounds = array<i64: 1, 64>}, {transform_indices = @transform_22, window_bounds = array<i64: 8, 64>}, {transform_indices = @transform_23, window_bounds = array<i64: 8, 64>}]} {
    %c0 = arith.constant 0 : index
    %c0_0 = arith.constant 0 : index
    %0 = vector.load %arg1[%c0, %c0_0] : memref<8x64xbf16, #tpu.memory_space<vmem>>, vector<8x64xbf16>
    %c0_1 = arith.constant 0 : index
    %c0_2 = arith.constant 0 : index
    %1 = vector.load %arg3[%c0_1, %c0_2] : memref<64x1024xbf16, #tpu.memory_space<vmem>>, vector<64x1024xbf16>
    %cst = arith.constant dense<0.000000e+00> : vector<8x1024xf32>
    %2 = tpu.matmul %0, %1, %cst {dimension_numbers = #tpu.dot_dimension_numbers<[1], [0], [0], [1], [0, 0, 1, 1], [], []>} : vector<8x64xbf16>, vector<64x1024xbf16>, vector<8x1024xf32> -> vector<8x1024xf32>
    %c0_3 = arith.constant 0 : index
    %c0_4 = arith.constant 0 : index
    %3 = vector.load %arg4[%c0_3, %c0_4] : memref<1x1024xf32, #tpu.memory_space<vmem>>, vector<1x1024xf32>
    %4 = vector.broadcast %3 : vector<1x1024xf32> to vector<8x1024xf32>
    %5 = arith.addf %2, %4 : vector<8x1024xf32>
    %cst_5 = arith.constant dense<0.000000e+00> : vector<8xf32>
    %6 = vector.multi_reduction <add>, %5, %cst_5 [1] : vector<8x1024xf32> to vector<8xf32>
    %7 = vector.shape_cast %6 : vector<8xf32> to vector<8x1xf32>
    %cst_6 = arith.constant 1.024000e+03 : f32
    %8 = vector.broadcast %cst_6 : f32 to vector<8x1xf32>
    %9 = arith.divf %7, %8 : vector<8x1xf32>
    %10 = arith.mulf %5, %5 : vector<8x1024xf32>
    %cst_7 = arith.constant dense<0.000000e+00> : vector<8xf32>
    %11 = vector.multi_reduction <add>, %10, %cst_7 [1] : vector<8x1024xf32> to vector<8xf32>
    %12 = vector.shape_cast %11 : vector<8xf32> to vector<8x1xf32>
    %cst_8 = arith.constant 1.024000e+03 : f32
    %13 = vector.broadcast %cst_8 : f32 to vector<8x1xf32>
    %14 = arith.divf %12, %13 : vector<8x1xf32>
    %15 = arith.mulf %9, %9 : vector<8x1xf32>
    %16 = arith.subf %14, %15 : vector<8x1xf32>
    %17 = vector.broadcast %9 : vector<8x1xf32> to vector<8x1024xf32>
    %18 = arith.subf %5, %17 : vector<8x1024xf32>
    %cst_9 = arith.constant 9.99999974E-6 : f32
    %19 = vector.broadcast %cst_9 : f32 to vector<8x1xf32>
    %20 = arith.addf %16, %19 : vector<8x1xf32>
    %21 = math.rsqrt %20 : vector<8x1xf32>
    %22 = vector.broadcast %21 : vector<8x1xf32> to vector<8x1024xf32>
    %23 = arith.mulf %18, %22 : vector<8x1024xf32>
    %c0_10 = arith.constant 0 : index
    %c0_11 = arith.constant 0 : index
    %24 = vector.load %arg5[%c0_10, %c0_11] : memref<1x1024xf32, #tpu.memory_space<vmem>>, vector<1x1024xf32>
    %25 = vector.broadcast %24 : vector<1x1024xf32> to vector<8x1024xf32>
    %26 = arith.mulf %23, %25 : vector<8x1024xf32>
    %c0_12 = arith.constant 0 : index
    %c0_13 = arith.constant 0 : index
    %27 = vector.load %arg6[%c0_12, %c0_13] : memref<1x1024xf32, #tpu.memory_space<vmem>>, vector<1x1024xf32>
    %28 = vector.broadcast %27 : vector<1x1024xf32> to vector<8x1024xf32>
    %29 = arith.addf %26, %28 : vector<8x1024xf32>
    %cst_14 = arith.constant 0.000000e+00 : f32
    %30 = vector.broadcast %cst_14 : f32 to vector<8x1024xf32>
    %31 = arith.maximumf %29, %30 : vector<8x1024xf32>
    %32 = arith.truncf %31 : vector<8x1024xf32> to vector<8x1024xbf16>
    %c0_15 = arith.constant 0 : index
    %c0_16 = arith.constant 0 : index
    %33 = vector.load %arg7[%c0_15, %c0_16] : memref<1024x256xbf16, #tpu.memory_space<vmem>>, vector<1024x256xbf16>
    %cst_17 = arith.constant dense<0.000000e+00> : vector<8x256xf32>
    %34 = tpu.matmul %32, %33, %cst_17 {dimension_numbers = #tpu.dot_dimension_numbers<[1], [0], [0], [1], [0, 0, 1, 1], [], []>} : vector<8x1024xbf16>, vector<1024x256xbf16>, vector<8x256xf32> -> vector<8x256xf32>
    %c0_18 = arith.constant 0 : index
    %c0_19 = arith.constant 0 : index
    %35 = vector.load %arg8[%c0_18, %c0_19] : memref<1x256xf32, #tpu.memory_space<vmem>>, vector<1x256xf32>
    %36 = vector.broadcast %35 : vector<1x256xf32> to vector<8x256xf32>
    %37 = arith.addf %34, %36 : vector<8x256xf32>
    %cst_20 = arith.constant dense<0.000000e+00> : vector<8xf32>
    %38 = vector.multi_reduction <add>, %37, %cst_20 [1] : vector<8x256xf32> to vector<8xf32>
    %39 = vector.shape_cast %38 : vector<8xf32> to vector<8x1xf32>
    %cst_21 = arith.constant 2.560000e+02 : f32
    %40 = vector.broadcast %cst_21 : f32 to vector<8x1xf32>
    %41 = arith.divf %39, %40 : vector<8x1xf32>
    %42 = arith.mulf %37, %37 : vector<8x256xf32>
    %cst_22 = arith.constant dense<0.000000e+00> : vector<8xf32>
    %43 = vector.multi_reduction <add>, %42, %cst_22 [1] : vector<8x256xf32> to vector<8xf32>
    %44 = vector.shape_cast %43 : vector<8xf32> to vector<8x1xf32>
    %cst_23 = arith.constant 2.560000e+02 : f32
    %45 = vector.broadcast %cst_23 : f32 to vector<8x1xf32>
    %46 = arith.divf %44, %45 : vector<8x1xf32>
    %47 = arith.mulf %41, %41 : vector<8x1xf32>
    %48 = arith.subf %46, %47 : vector<8x1xf32>
    %49 = vector.broadcast %41 : vector<8x1xf32> to vector<8x256xf32>
    %50 = arith.subf %37, %49 : vector<8x256xf32>
    %cst_24 = arith.constant 9.99999974E-6 : f32
    %51 = vector.broadcast %cst_24 : f32 to vector<8x1xf32>
    %52 = arith.addf %48, %51 : vector<8x1xf32>
    %53 = math.rsqrt %52 : vector<8x1xf32>
    %54 = vector.broadcast %53 : vector<8x1xf32> to vector<8x256xf32>
    %55 = arith.mulf %50, %54 : vector<8x256xf32>
    %c0_25 = arith.constant 0 : index
    %c0_26 = arith.constant 0 : index
    %56 = vector.load %arg9[%c0_25, %c0_26] : memref<1x256xf32, #tpu.memory_space<vmem>>, vector<1x256xf32>
    %57 = vector.broadcast %56 : vector<1x256xf32> to vector<8x256xf32>
    %58 = arith.mulf %55, %57 : vector<8x256xf32>
    %c0_27 = arith.constant 0 : index
    %c0_28 = arith.constant 0 : index
    %59 = vector.load %arg10[%c0_27, %c0_28] : memref<1x256xf32, #tpu.memory_space<vmem>>, vector<1x256xf32>
    %60 = vector.broadcast %59 : vector<1x256xf32> to vector<8x256xf32>
    %61 = arith.addf %58, %60 : vector<8x256xf32>
    %cst_29 = arith.constant 0.000000e+00 : f32
    %62 = vector.broadcast %cst_29 : f32 to vector<8x256xf32>
    %63 = arith.maximumf %61, %62 : vector<8x256xf32>
    %64 = arith.truncf %63 : vector<8x256xf32> to vector<8x256xbf16>
    %c0_30 = arith.constant 0 : index
    %c0_31 = arith.constant 0 : index
    %65 = vector.load %arg11[%c0_30, %c0_31] : memref<256x64xbf16, #tpu.memory_space<vmem>>, vector<256x64xbf16>
    %cst_32 = arith.constant dense<0.000000e+00> : vector<8x64xf32>
    %66 = tpu.matmul %64, %65, %cst_32 {dimension_numbers = #tpu.dot_dimension_numbers<[1], [0], [0], [1], [0, 0, 1, 1], [], []>} : vector<8x256xbf16>, vector<256x64xbf16>, vector<8x64xf32> -> vector<8x64xf32>
    %c0_33 = arith.constant 0 : index
    %c0_34 = arith.constant 0 : index
    %67 = vector.load %arg12[%c0_33, %c0_34] : memref<1x64xf32, #tpu.memory_space<vmem>>, vector<1x64xf32>
    %68 = vector.broadcast %67 : vector<1x64xf32> to vector<8x64xf32>
    %69 = arith.addf %66, %68 : vector<8x64xf32>
    %70 = vector.extract_strided_slice %69 {offsets = [0, 0], sizes = [8, 32], strides = [1, 1]} : vector<8x64xf32> to vector<8x32xf32>
    %71 = vector.extract_strided_slice %69 {offsets = [0, 32], sizes = [8, 32], strides = [1, 1]} : vector<8x64xf32> to vector<8x32xf32>
    %cst_35 = arith.constant 5.000000e-01 : f32
    %72 = vector.broadcast %cst_35 : f32 to vector<8x32xf32>
    %73 = arith.mulf %72, %71 : vector<8x32xf32>
    %74 = math.exp %73 : vector<8x32xf32>
    %c0_36 = arith.constant 0 : index
    %c0_37 = arith.constant 0 : index
    %75 = vector.load %arg2[%c0_36, %c0_37] : memref<8x32xf32, #tpu.memory_space<vmem>>, vector<8x32xf32>
    %76 = arith.mulf %75, %74 : vector<8x32xf32>
    %77 = arith.addf %70, %76 : vector<8x32xf32>
    %78 = arith.truncf %77 : vector<8x32xf32> to vector<8x32xbf16>
    %c0_38 = arith.constant 0 : index
    %c0_39 = arith.constant 0 : index
    %79 = vector.load %arg13[%c0_38, %c0_39] : memref<32x256xbf16, #tpu.memory_space<vmem>>, vector<32x256xbf16>
    %cst_40 = arith.constant dense<0.000000e+00> : vector<8x256xf32>
    %80 = tpu.matmul %78, %79, %cst_40 {dimension_numbers = #tpu.dot_dimension_numbers<[1], [0], [0], [1], [0, 0, 1, 1], [], []>} : vector<8x32xbf16>, vector<32x256xbf16>, vector<8x256xf32> -> vector<8x256xf32>
    %c0_41 = arith.constant 0 : index
    %c0_42 = arith.constant 0 : index
    %81 = vector.load %arg14[%c0_41, %c0_42] : memref<1x256xf32, #tpu.memory_space<vmem>>, vector<1x256xf32>
    %82 = vector.broadcast %81 : vector<1x256xf32> to vector<8x256xf32>
    %83 = arith.addf %80, %82 : vector<8x256xf32>
    %cst_43 = arith.constant dense<0.000000e+00> : vector<8xf32>
    %84 = vector.multi_reduction <add>, %83, %cst_43 [1] : vector<8x256xf32> to vector<8xf32>
    %85 = vector.shape_cast %84 : vector<8xf32> to vector<8x1xf32>
    %cst_44 = arith.constant 2.560000e+02 : f32
    %86 = vector.broadcast %cst_44 : f32 to vector<8x1xf32>
    %87 = arith.divf %85, %86 : vector<8x1xf32>
    %88 = arith.mulf %83, %83 : vector<8x256xf32>
    %cst_45 = arith.constant dense<0.000000e+00> : vector<8xf32>
    %89 = vector.multi_reduction <add>, %88, %cst_45 [1] : vector<8x256xf32> to vector<8xf32>
    %90 = vector.shape_cast %89 : vector<8xf32> to vector<8x1xf32>
    %cst_46 = arith.constant 2.560000e+02 : f32
    %91 = vector.broadcast %cst_46 : f32 to vector<8x1xf32>
    %92 = arith.divf %90, %91 : vector<8x1xf32>
    %93 = arith.mulf %87, %87 : vector<8x1xf32>
    %94 = arith.subf %92, %93 : vector<8x1xf32>
    %95 = vector.broadcast %87 : vector<8x1xf32> to vector<8x256xf32>
    %96 = arith.subf %83, %95 : vector<8x256xf32>
    %cst_47 = arith.constant 9.99999974E-6 : f32
    %97 = vector.broadcast %cst_47 : f32 to vector<8x1xf32>
    %98 = arith.addf %94, %97 : vector<8x1xf32>
    %99 = math.rsqrt %98 : vector<8x1xf32>
    %100 = vector.broadcast %99 : vector<8x1xf32> to vector<8x256xf32>
    %101 = arith.mulf %96, %100 : vector<8x256xf32>
    %c0_48 = arith.constant 0 : index
    %c0_49 = arith.constant 0 : index
    %102 = vector.load %arg15[%c0_48, %c0_49] : memref<1x256xf32, #tpu.memory_space<vmem>>, vector<1x256xf32>
    %103 = vector.broadcast %102 : vector<1x256xf32> to vector<8x256xf32>
    %104 = arith.mulf %101, %103 : vector<8x256xf32>
    %c0_50 = arith.constant 0 : index
    %c0_51 = arith.constant 0 : index
    %105 = vector.load %arg16[%c0_50, %c0_51] : memref<1x256xf32, #tpu.memory_space<vmem>>, vector<1x256xf32>
    %106 = vector.broadcast %105 : vector<1x256xf32> to vector<8x256xf32>
    %107 = arith.addf %104, %106 : vector<8x256xf32>
    %cst_52 = arith.constant 0.000000e+00 : f32
    %108 = vector.broadcast %cst_52 : f32 to vector<8x256xf32>
    %109 = arith.maximumf %107, %108 : vector<8x256xf32>
    %110 = arith.truncf %109 : vector<8x256xf32> to vector<8x256xbf16>
    %c0_53 = arith.constant 0 : index
    %c0_54 = arith.constant 0 : index
    %111 = vector.load %arg17[%c0_53, %c0_54] : memref<256x1024xbf16, #tpu.memory_space<vmem>>, vector<256x1024xbf16>
    %cst_55 = arith.constant dense<0.000000e+00> : vector<8x1024xf32>
    %112 = tpu.matmul %110, %111, %cst_55 {dimension_numbers = #tpu.dot_dimension_numbers<[1], [0], [0], [1], [0, 0, 1, 1], [], []>} : vector<8x256xbf16>, vector<256x1024xbf16>, vector<8x1024xf32> -> vector<8x1024xf32>
    %c0_56 = arith.constant 0 : index
    %c0_57 = arith.constant 0 : index
    %113 = vector.load %arg18[%c0_56, %c0_57] : memref<1x1024xf32, #tpu.memory_space<vmem>>, vector<1x1024xf32>
    %114 = vector.broadcast %113 : vector<1x1024xf32> to vector<8x1024xf32>
    %115 = arith.addf %112, %114 : vector<8x1024xf32>
    %cst_58 = arith.constant dense<0.000000e+00> : vector<8xf32>
    %116 = vector.multi_reduction <add>, %115, %cst_58 [1] : vector<8x1024xf32> to vector<8xf32>
    %117 = vector.shape_cast %116 : vector<8xf32> to vector<8x1xf32>
    %cst_59 = arith.constant 1.024000e+03 : f32
    %118 = vector.broadcast %cst_59 : f32 to vector<8x1xf32>
    %119 = arith.divf %117, %118 : vector<8x1xf32>
    %120 = arith.mulf %115, %115 : vector<8x1024xf32>
    %cst_60 = arith.constant dense<0.000000e+00> : vector<8xf32>
    %121 = vector.multi_reduction <add>, %120, %cst_60 [1] : vector<8x1024xf32> to vector<8xf32>
    %122 = vector.shape_cast %121 : vector<8xf32> to vector<8x1xf32>
    %cst_61 = arith.constant 1.024000e+03 : f32
    %123 = vector.broadcast %cst_61 : f32 to vector<8x1xf32>
    %124 = arith.divf %122, %123 : vector<8x1xf32>
    %125 = arith.mulf %119, %119 : vector<8x1xf32>
    %126 = arith.subf %124, %125 : vector<8x1xf32>
    %127 = vector.broadcast %119 : vector<8x1xf32> to vector<8x1024xf32>
    %128 = arith.subf %115, %127 : vector<8x1024xf32>
    %cst_62 = arith.constant 9.99999974E-6 : f32
    %129 = vector.broadcast %cst_62 : f32 to vector<8x1xf32>
    %130 = arith.addf %126, %129 : vector<8x1xf32>
    %131 = math.rsqrt %130 : vector<8x1xf32>
    %132 = vector.broadcast %131 : vector<8x1xf32> to vector<8x1024xf32>
    %133 = arith.mulf %128, %132 : vector<8x1024xf32>
    %c0_63 = arith.constant 0 : index
    %c0_64 = arith.constant 0 : index
    %134 = vector.load %arg19[%c0_63, %c0_64] : memref<1x1024xf32, #tpu.memory_space<vmem>>, vector<1x1024xf32>
    %135 = vector.broadcast %134 : vector<1x1024xf32> to vector<8x1024xf32>
    %136 = arith.mulf %133, %135 : vector<8x1024xf32>
    %c0_65 = arith.constant 0 : index
    %c0_66 = arith.constant 0 : index
    %137 = vector.load %arg20[%c0_65, %c0_66] : memref<1x1024xf32, #tpu.memory_space<vmem>>, vector<1x1024xf32>
    %138 = vector.broadcast %137 : vector<1x1024xf32> to vector<8x1024xf32>
    %139 = arith.addf %136, %138 : vector<8x1024xf32>
    %cst_67 = arith.constant 0.000000e+00 : f32
    %140 = vector.broadcast %cst_67 : f32 to vector<8x1024xf32>
    %141 = arith.maximumf %139, %140 : vector<8x1024xf32>
    %142 = arith.truncf %141 : vector<8x1024xf32> to vector<8x1024xbf16>
    %c0_68 = arith.constant 0 : index
    %c0_69 = arith.constant 0 : index
    %143 = vector.load %arg21[%c0_68, %c0_69] : memref<1024x64xbf16, #tpu.memory_space<vmem>>, vector<1024x64xbf16>
    %cst_70 = arith.constant dense<0.000000e+00> : vector<8x64xf32>
    %144 = tpu.matmul %142, %143, %cst_70 {dimension_numbers = #tpu.dot_dimension_numbers<[1], [0], [0], [1], [0, 0, 1, 1], [], []>} : vector<8x1024xbf16>, vector<1024x64xbf16>, vector<8x64xf32> -> vector<8x64xf32>
    %c0_71 = arith.constant 0 : index
    %c0_72 = arith.constant 0 : index
    %145 = vector.load %arg22[%c0_71, %c0_72] : memref<1x64xf32, #tpu.memory_space<vmem>>, vector<1x64xf32>
    %146 = vector.broadcast %145 : vector<1x64xf32> to vector<8x64xf32>
    %147 = arith.addf %144, %146 : vector<8x64xf32>
    %c0_73 = arith.constant 0 : index
    %c0_74 = arith.constant 0 : index
    %148 = vector.load %arg23[%c0_73, %c0_74] : memref<8x64xf32, #tpu.memory_space<vmem>>, vector<8x64xf32>
    tpu.vector_store %arg23[%c0_73, %c0_74], %147 {strides = array<i32>} : memref<8x64xf32, #tpu.memory_space<vmem>>, vector<8x64xf32>,
    %c0_75 = arith.constant 0 : index
    %c0_76 = arith.constant 0 : index
    %149 = vector.load %arg24[%c0_75, %c0_76] : memref<8x64xf32, #tpu.memory_space<vmem>>, vector<8x64xf32>
    tpu.vector_store %arg24[%c0_75, %c0_76], %69 {strides = array<i32>} : memref<8x64xf32, #tpu.memory_space<vmem>>, vector<8x64xf32>,
    return
  }
  func.func @transform_0(%arg0: i32) -> (i32, i32) {
    %c0_i32 = arith.constant 0 : i32
    %c0_i32_0 = arith.constant 0 : i32
    return %arg0, %c0_i32 : i32, i32
  }
  func.func @transform_1(%arg0: i32) -> (i32, i32) {
    %c0_i32 = arith.constant 0 : i32
    %c0_i32_0 = arith.constant 0 : i32
    return %arg0, %c0_i32 : i32, i32
  }
  func.func @transform_2(%arg0: i32) -> (i32, i32) {
    %c0_i32 = arith.constant 0 : i32
    %c0_i32_0 = arith.constant 0 : i32
    %c0_i32_1 = arith.constant 0 : i32
    return %c0_i32, %c0_i32_0 : i32, i32
  }
  func.func @transform_3(%arg0: i32) -> (i32, i32) {
    %c0_i32 = arith.constant 0 : i32
    %c0_i32_0 = arith.constant 0 : i32
    %c0_i32_1 = arith.constant 0 : i32
    return %c0_i32, %c0_i32_0 : i32, i32
  }
  func.func @transform_4(%arg0: i32) -> (i32, i32) {
    %c0_i32 = arith.constant 0 : i32
    %c0_i32_0 = arith.constant 0 : i32
    %c0_i32_1 = arith.constant 0 : i32
    return %c0_i32, %c0_i32_0 : i32, i32
  }
  func.func @transform_5(%arg0: i32) -> (i32, i32) {
    %c0_i32 = arith.constant 0 : i32
    %c0_i32_0 = arith.constant 0 : i32
    %c0_i32_1 = arith.constant 0 : i32
    return %c0_i32, %c0_i32_0 : i32, i32
  }
  func.func @transform_6(%arg0: i32) -> (i32, i32) {
    %c0_i32 = arith.constant 0 : i32
    %c0_i32_0 = arith.constant 0 : i32
    %c0_i32_1 = arith.constant 0 : i32
    return %c0_i32, %c0_i32_0 : i32, i32
  }
  func.func @transform_7(%arg0: i32) -> (i32, i32) {
    %c0_i32 = arith.constant 0 : i32
    %c0_i32_0 = arith.constant 0 : i32
    %c0_i32_1 = arith.constant 0 : i32
    return %c0_i32, %c0_i32_0 : i32, i32
  }
  func.func @transform_8(%arg0: i32) -> (i32, i32) {
    %c0_i32 = arith.constant 0 : i32
    %c0_i32_0 = arith.constant 0 : i32
    %c0_i32_1 = arith.constant 0 : i32
    return %c0_i32, %c0_i32_0 : i32, i32
  }
  func.func @transform_9(%arg0: i32) -> (i32, i32) {
    %c0_i32 = arith.constant 0 : i32
    %c0_i32_0 = arith.constant 0 : i32
    %c0_i32_1 = arith.constant 0 : i32
    return %c0_i32, %c0_i32_0 : i32, i32
  }
  func.func @transform_10(%arg0: i32) -> (i32, i32) {
    %c0_i32 = arith.constant 0 : i32
    %c0_i32_0 = arith.constant 0 : i32
    %c0_i32_1 = arith.constant 0 : i32
    return %c0_i32, %c0_i32_0 : i32, i32
  }
  func.func @transform_11(%arg0: i32) -> (i32, i32) {
    %c0_i32 = arith.constant 0 : i32
    %c0_i32_0 = arith.constant 0 : i32
    %c0_i32_1 = arith.constant 0 : i32
    return %c0_i32, %c0_i32_0 : i32, i32
  }
  func.func @transform_12(%arg0: i32) -> (i32, i32) {
    %c0_i32 = arith.constant 0 : i32
    %c0_i32_0 = arith.constant 0 : i32
    %c0_i32_1 = arith.constant 0 : i32
    return %c0_i32, %c0_i32_0 : i32, i32
  }
  func.func @transform_13(%arg0: i32) -> (i32, i32) {
    %c0_i32 = arith.constant 0 : i32
    %c0_i32_0 = arith.constant 0 : i32
    %c0_i32_1 = arith.constant 0 : i32
    return %c0_i32, %c0_i32_0 : i32, i32
  }
  func.func @transform_14(%arg0: i32) -> (i32, i32) {
    %c0_i32 = arith.constant 0 : i32
    %c0_i32_0 = arith.constant 0 : i32
    %c0_i32_1 = arith.constant 0 : i32
    return %c0_i32, %c0_i32_0 : i32, i32
  }
  func.func @transform_15(%arg0: i32) -> (i32, i32) {
    %c0_i32 = arith.constant 0 : i32
    %c0_i32_0 = arith.constant 0 : i32
    %c0_i32_1 = arith.constant 0 : i32
    return %c0_i32, %c0_i32_0 : i32, i32
  }
  func.func @transform_16(%arg0: i32) -> (i32, i32) {
    %c0_i32 = arith.constant 0 : i32
    %c0_i32_0 = arith.constant 0 : i32
    %c0_i32_1 = arith.constant 0 : i32
    return %c0_i32, %c0_i32_0 : i32, i32
  }
  func.func @transform_17(%arg0: i32) -> (i32, i32) {
    %c0_i32 = arith.constant 0 : i32
    %c0_i32_0 = arith.constant 0 : i32
    %c0_i32_1 = arith.constant 0 : i32
    return %c0_i32, %c0_i32_0 : i32, i32
  }
  func.func @transform_18(%arg0: i32) -> (i32, i32) {
    %c0_i32 = arith.constant 0 : i32
    %c0_i32_0 = arith.constant 0 : i32
    %c0_i32_1 = arith.constant 0 : i32
    return %c0_i32, %c0_i32_0 : i32, i32
  }
  func.func @transform_19(%arg0: i32) -> (i32, i32) {
    %c0_i32 = arith.constant 0 : i32
    %c0_i32_0 = arith.constant 0 : i32
    %c0_i32_1 = arith.constant 0 : i32
    return %c0_i32, %c0_i32_0 : i32, i32
  }
  func.func @transform_20(%arg0: i32) -> (i32, i32) {
    %c0_i32 = arith.constant 0 : i32
    %c0_i32_0 = arith.constant 0 : i32
    %c0_i32_1 = arith.constant 0 : i32
    return %c0_i32, %c0_i32_0 : i32, i32
  }
  func.func @transform_21(%arg0: i32) -> (i32, i32) {
    %c0_i32 = arith.constant 0 : i32
    %c0_i32_0 = arith.constant 0 : i32
    %c0_i32_1 = arith.constant 0 : i32
    return %c0_i32, %c0_i32_0 : i32, i32
  }
  func.func @transform_22(%arg0: i32) -> (i32, i32) {
    %c0_i32 = arith.constant 0 : i32
    %c0_i32_0 = arith.constant 0 : i32
    return %arg0, %c0_i32 : i32, i32
  }
  func.func @transform_23(%arg0: i32) -> (i32, i32) {
    %c0_i32 = arith.constant 0 : i32
    %c0_i32_0 = arith.constant 0 : i32
    return %arg0, %c0_i32 : i32, i32
  }
}

</mosaic_0001>

<bundles_post_ra>
// kernel: tpu_custom_call.1
= control target key start
LH: loop header
LB: loop body
LE: loop exit
PB: predicated region body
PF: predicated region fallthrough
CT: control target
= control target key end

     0   :  { %s5495_s0 = inlined_call_operand.vmem [shape: bf16[8,64], index: 0, kind: input, shape index: {}]   ;;  %s5496_s1 = inlined_call_operand.vmem [shape: f32[8,32], index: 1, kind: input, shape index: {}]   ;;  %s5497_s2 = inlined_call_operand.vmem [shape: bf16[64,1024], index: 2, kind: input, shape index: {}]   ;;  %s5498_s3 = inlined_call_operand.vmem [shape: f32[1,1024], index: 3, kind: input, shape index: {}]   ;;  %s5499_s4 = inlined_call_operand.vmem [shape: f32[1,1024], index: 4, kind: input, shape index: {}]   ;;  %s5500_s5 = inlined_call_operand.vmem [shape: f32[1,1024], index: 5, kind: input, shape index: {}]   ;;  %s5501_s6 = inlined_call_operand.hbm [shape: bf16[1024,256], index: 6, kind: input, shape index: {}]   ;;  %s5502_s7 = inlined_call_operand.vmem [shape: f32[1,256], index: 7, kind: input, shape index: {}]   ;;  %s5503_s8 = inlined_call_operand.vmem [shape: f32[1,256], index: 8, kind: input, shape index: {}]   ;;  %s5504_s9 = inlined_call_operand.vmem [shape: f32[1,256], index: 9, kind: input, shape index: {}]   ;;  %s5505_s10 = inlined_call_operand.vmem [shape: bf16[256,64], index: 10, kind: input, shape index: {}]   ;;  %s5506_s11 = inlined_call_operand.vmem [shape: f32[1,64], index: 11, kind: input, shape index: {}]   ;;  %s5507_s12 = inlined_call_operand.vmem [shape: bf16[32,256], index: 12, kind: input, shape index: {}]   ;;  %s5508_s13 = inlined_call_operand.vmem [shape: f32[1,256], index: 13, kind: input, shape index: {}]   ;;  %s5509_s14 = inlined_call_operand.vmem [shape: f32[1,256], index: 14, kind: input, shape index: {}]   ;;  %s5510_s15 = inlined_call_operand.vmem [shape: f32[1,256], index: 15, kind: input, shape index: {}]   ;;  %s5511_s16 = inlined_call_operand.hbm [shape: bf16[256,1024], index: 16, kind: input, shape index: {}]   ;;  %s5512_s17 = inlined_call_operand.vmem [shape: f32[1,1024], index: 17, kind: input, shape index: {}]   ;;  %s5513_s18 = inlined_call_operand.vmem [shape: f32[1,1024], index: 18, kind: input, shape index: {}]   ;;  %s5514_s19 = inlined_call_operand.vmem [shape: f32[1,1024], index: 19, kind: input, shape index: {}]   ;;  %s5515_s20 = inlined_call_operand.vmem [shape: bf16[1024,64], index: 20, kind: input, shape index: {}]   ;;  %s5516_s21 = inlined_call_operand.vmem [shape: f32[1,64], index: 21, kind: input, shape index: {}]   ;;  %s5517_s22 = inlined_call_operand.hbm [shape: f32[8,64], index: 22, kind: output, shape index: {0}]   ;;  %s5518_s23 = inlined_call_operand.hbm [shape: f32[8,64], index: 23, kind: output, shape index: {1}]  }
   0x1   :  { %5520 = sst [smem:[#allocation14_spill]] %s5495_s0 }
   0x2   :  { %5521 = sst [smem:[#allocation15_spill]] %s5496_s1 }
   0x3   :  { %5522 = sst [smem:[#allocation16_spill]] %s5497_s2 }
   0x4   :  { %5523 = sst [smem:[#allocation17_spill]] %s5498_s3 }
   0x5   :  { %5524 = sst [smem:[#allocation18_spill]] %s5499_s4 }
   0x6   :  { %5525 = sst [smem:[#allocation19_spill]] %s5500_s5 }
   0x7   :  { %5526 = sst [smem:[#allocation20_spill]] %s5501_s6 }
   0x8   :  { %5527 = sst [smem:[#allocation21_spill]] %s5502_s7 }
   0x9   :  { %29 = vsyncpa [#allocation3], 0 }
   0xa   :  { %30 = vsyncpa [#allocation6], 0 }
   0xb   :  { %31 = vsyncpa [#allocation4], 0 }
   0xc   :  { %32 = vsyncpa [#allocation9], 0  ;;  %s4708_s4 = smov [#allocation2]  }
   0xd   :  { %s50_s30 = sshll.u32 %s4708_s4, 4  ;;  %s51_s30 = int_to_ptr.vmem [resolvable:$true] %s50_s30 }
   0xe   :  { %s4628_s24 = scalar_lea.vmem %s51_s30, 16384  ;;  %p4633_p1 = scmp.lt.s32.totalorder %s51_s30, %s51_s30 }
   0xf   :  { %p4629_p0 = scmp.ne.s32.totalorder %s51_s30, %s4628_s24  ;;  %p4634_p2 = scmp.lt.s32.totalorder %s4628_s24, %s4628_s24 }
  0x11   :  { %p4635_p3 = por %p4634_p2, %p4633_p1 }
  0x13   :  { %p4636_p4 = pnand %p4635_p3, %p4629_p0 }
  0x15   :  { %4639 = shalt.err (!%p4636_p4)
}
  0x16   :  { %s4709_s25 = smov 128   ;;  %s4710_s5 = smov 8  }
  0x17   :  { %s5528_s2 = sld [smem:[#allocation20_spill]]  ;;  %s4711_s6 = smov [#allocation5]  }
  0x18   :  { %s80_s27 = sshll.u32 %s4711_s6, 4  ;;  %s81_s27 = int_to_ptr.vmem [resolvable:$true] %s80_s27 }
  0x19   :  { %s4648_s7 = scalar_lea.vmem %s81_s27, 16384  ;;  %p4653_p6 = scmp.lt.s32.totalorder %s81_s27, %s81_s27 }
  0x1a   :  { %p4649_p5 = scmp.ne.s32.totalorder %s81_s27, %s4648_s7  ;;  %p4654_p7 = scmp.lt.s32.totalorder %s4648_s7, %s4648_s7 }
  0x1c   :  { %p4655_p8 = por %p4654_p7, %p4653_p6 }
  0x1d   :  { %56 = dma.hbm_to_vmem [thread:$0]  %s5528_s2, 16384, %s51_s30, [#allocation3], %s4709_s25, %s4709_s25, %s4710_s5  }
  0x1e   :  { %p4656_p9 = pnand %p4655_p8, %p4649_p5 }
  0x20   :  { %4659 = shalt.err (!%p4656_p9)
}
  0x21   :  { %s4712_s28 = smov 512   ;;  %s4713_s29 = smov 32  }
  0x22   :  { %86 = dma.hbm_to_vmem [thread:$0]  %s5511_s16, 16384, %s81_s27, [#allocation6], %s4712_s28, %s4712_s28, %s4713_s29  }
  0x23   :  { %4700 = dma.done.wait [#allocation3], 16384  }
  0x24   :  { %4701 = vsyncadd [#allocation3], 4294950912 }
  0x25   :  { %4702 = dma.done.wait [#allocation6], 16384  }
  0x26   :  { %4703 = vsyncadd [#allocation6], 4294950912  ;;  %v4714_v0 = vmov 0   ;;  %s5529_s24 = sld [smem:[#allocation16_spill]]  ;;  %vm339_vm0 = vcmask 523264   ;;  %vm1889_vm1 = vcmask 261120  }
  0x27   :  { %375 = vmatprep.mubr.bf16.mxu1 %v4714_v0  ;;  %457 = vmatprep.mubr.bf16.mxu0 %v4714_v0  ;;  %s5530_s29 = sld [smem:[#allocation14_spill]]  ;;  %s4716_s26 = smov [#allocation8]  }
  0x28   :  { %s5531_s6 = sld [smem:[#allocation17_spill]]  ;;  %s3819_s16 = sshll.u32 %s4716_s26, 4  ;;  %s3820_s16 = int_to_ptr.vmem [resolvable:$true] %s3819_s16 }
  0x29   :  { %s5532_s28 = sld [smem:[#allocation18_spill]]  ;;  %p4665_p11 = scmp.lt.s32.totalorder %s3820_s16, %s3820_s16 }
  0x2a   :  { %s5533_s0 = sld [smem:[#allocation19_spill]] }
  0x2b   :  { %s5534_s25 = sld [smem:[#allocation21_spill]] }
  0x2c   :  { %v129_v1 = vld [vmem:[%s5529_s24 + $0xc0] sm:$0xff]  ;;  %v131_v11 = vld [vmem:[%s5529_s24 + $0xd0] sm:$0xff]  ;;  %v130_v26 = vld [vmem:[%s5529_s24 + $0xc8] sm:$0xff]  ;;  %s5535_s4 = sld [smem:[#allocation15_spill]] }
  0x2d   :  { %v133_v2 = vld [vmem:[%s5529_s24 + $0xe0] sm:$0xff]  ;;  %v135_v12 = vld [vmem:[%s5529_s24 + $0xf0] sm:$0xff]  ;;  %v134_v28 = vld [vmem:[%s5529_s24 + $0xe8] sm:$0xff] }
  0x2e   :  { %v121_v3 = vld [vmem:[%s5529_s24 + $0x80] sm:$0xff]  ;;  %v3858_v4 = vcombine.high %v129_v1, %v133_v2  ;;  %v3857_v5 = vcombine.low %v129_v1, %v133_v2  ;;  %v3862_v14 = vcombine.high %v131_v11, %v135_v12  ;;  %v3861_v15 = vcombine.low %v131_v11, %v135_v12  ;;  %v123_v16 = vld [vmem:[%s5529_s24 + $0x90] sm:$0xff]  ;;  %v122_v32 = vld [vmem:[%s5529_s24 + $0x88] sm:$0xff] }
  0x2f   :  { %v125_v6 = vld [vmem:[%s5529_s24 + $0xa0] sm:$0xff]  ;;  %v127_v19 = vld [vmem:[%s5529_s24 + $0xb0] sm:$0xff]  ;;  %v126_v33 = vld [vmem:[%s5529_s24 + $0xa8] sm:$0xff]  ;;  %v3860_v35 = vcombine.high %v130_v26, %v134_v28  ;;  %v3859_v38 = vcombine.low %v130_v26, %v134_v28 }
  0x30   :  { %v3850_v7 = vcombine.high %v121_v3, %v125_v6  ;;  %v113_v8 = vld [vmem:[%s5529_s24 + $0x40] sm:$0xff]  ;;  %351 = vmatprep.subr.bf16.mxu1 %v3858_v4  ;;  %v3849_v10 = vcombine.low %v121_v3, %v125_v6  ;;  %433 = vmatprep.subr.bf16.mxu0 %v3862_v14  ;;  %v3854_v20 = vcombine.high %v123_v16, %v127_v19  ;;  %v115_v21 = vld [vmem:[%s5529_s24 + $0x50] sm:$0xff]  ;;  %v114_v39 = vld [vmem:[%s5529_s24 + $0x48] sm:$0xff] }
  0x31   :  { %v117_v9 = vld [vmem:[%s5529_s24 + $0x60] sm:$0xff]  ;;  %352 = vmatpush1.bf16.msra.mxu1 %v3857_v5  ;;  %v119_v22 = vld [vmem:[%s5529_s24 + $0x70] sm:$0xff]  ;;  %434 = vmatpush1.bf16.msra.mxu0 %v3861_v15  ;;  %v3853_v24 = vcombine.low %v123_v16, %v127_v19  ;;  %v118_v40 = vld [vmem:[%s5529_s24 + $0x68] sm:$0xff]  ;;  %v3852_v41 = vcombine.high %v122_v32, %v126_v33  ;;  %v3851_v43 = vcombine.low %v122_v32, %v126_v33 }
  0x32   :  { %353 = vmatprep.subr.bf16.mxu1 %v3850_v7  ;;  %v3842_v13 = vcombine.high %v113_v8, %v117_v9  ;;  %v105_v17 = vld [vmem:[%s5529_s24] sm:$0xff]  ;;  %v3841_v23 = vcombine.low %v113_v8, %v117_v9  ;;  %435 = vmatprep.subr.bf16.mxu0 %v3854_v20  ;;  %v3846_v27 = vcombine.high %v115_v21, %v119_v22  ;;  %v107_v29 = vld [vmem:[%s5529_s24 + $0x10] sm:$0xff]  ;;  %v106_v44 = vld [vmem:[%s5529_s24 + $0x8] sm:$0xff] }
  0x33   :  { %v109_v18 = vld [vmem:[%s5529_s24 + $0x20] sm:$0xff]  ;;  %v111_v30 = vld [vmem:[%s5529_s24 + $0x30] sm:$0xff]  ;;  %v3845_v34 = vcombine.low %v115_v21, %v119_v22  ;;  %v110_v45 = vld [vmem:[%s5529_s24 + $0x28] sm:$0xff]  ;;  %v3844_v46 = vcombine.high %v114_v39, %v118_v40  ;;  %v3843_v47 = vcombine.low %v114_v39, %v118_v40 }
  0x34   :  { %v3834_v25 = vcombine.high %v105_v17, %v109_v18  ;;  %v3833_v31 = vcombine.low %v105_v17, %v109_v18  ;;  %v3838_v36 = vcombine.high %v107_v29, %v111_v30  ;;  %v104_v37 = vld [vmem:[%s5530_s29] sm:$0xf]  ;;  %v3837_v42 = vcombine.low %v107_v29, %v111_v30  ;;  %v132_v48 = vld [vmem:[%s5529_s24 + $0xd8] sm:$0xff]  ;;  %v4340_v7 = vld [vmem:[#allocation2 + $0x64] ss:$8 sps:$4 sm:$0xff]  }
  0x35   :  { %354 = vmatpush1.bf16.msra.mxu1 %v3849_v10  ;;  %436 = vmatpush1.bf16.msra.mxu0 %v3853_v24  ;;  %v136_v49 = vld [vmem:[%s5529_s24 + $0xf8] sm:$0xff]  ;;  %v3836_v50 = vcombine.high %v106_v44, %v110_v45  ;;  %v3835_v51 = vcombine.low %v106_v44, %v110_v45  ;;  %v4343_v8 = vld [vmem:[#allocation2 + $0x164] ss:$8 sps:$4 sm:$0xff]   ;;  %v4338_v9 = vld [vmem:[#allocation2 + $0x60] ss:$8 sps:$4 sm:$0xff]  }
  0x36   :  { %355 = vmatprep.subr.bf16.mxu1 %v3842_v13  ;;  %437 = vmatprep.subr.bf16.mxu0 %v3846_v27  ;;  %v124_v52 = vld [vmem:[%s5529_s24 + $0x98] sm:$0xff]  ;;  %v3864_v54 = vcombine.high %v132_v48, %v136_v49  ;;  %v3863_v55 = vcombine.low %v132_v48, %v136_v49  ;;  %v4341_v10 = vld [vmem:[#allocation2 + $0x160] ss:$8 sps:$4 sm:$0xff]   ;;  %v4352_v15 = vld [vmem:[#allocation2 + $0x44] ss:$8 sps:$4 sm:$0xff]  }
  0x37   :  { %v128_v53 = vld [vmem:[%s5529_s24 + $0xb8] sm:$0xff]  ;;  %v4355_v16 = vld [vmem:[#allocation2 + $0x144] ss:$8 sps:$4 sm:$0xff]   ;;  %v4350_v17 = vld [vmem:[#allocation2 + $0x40] ss:$8 sps:$4 sm:$0xff]  }
  0x38   :  { %v116_v56 = vld [vmem:[%s5529_s24 + $0x58] sm:$0xff]  ;;  %v3856_v58 = vcombine.high %v124_v52, %v128_v53  ;;  %v3855_v59 = vcombine.low %v124_v52, %v128_v53  ;;  %v4353_v18 = vld [vmem:[#allocation2 + $0x140] ss:$8 sps:$4 sm:$0xff]   ;;  %v4367_v24 = vld [vmem:[#allocation2 + $0x124] ss:$8 sps:$4 sm:$0xff]  }
  0x39   :  { %356 = vmatpush1.bf16.msra.mxu1 %v3841_v23  ;;  %438 = vmatpush1.bf16.msra.mxu0 %v3845_v34  ;;  %v120_v57 = vld [vmem:[%s5529_s24 + $0x78] sm:$0xff]  ;;  %v4364_v23 = vld [vmem:[#allocation2 + $0x24] ss:$8 sps:$4 sm:$0xff]   ;;  %v4365_v26 = vld [vmem:[#allocation2 + $0x120] ss:$8 sps:$4 sm:$0xff]  }
  0x3a   :  { %357 = vmatprep.subr.bf16.mxu1 %v3834_v25  ;;  %439 = vmatprep.subr.bf16.mxu0 %v3838_v36  ;;  %v108_v60 = vld [vmem:[%s5529_s24 + $0x18] sm:$0xff]  ;;  %v3848_v62 = vcombine.high %v116_v56, %v120_v57  ;;  %v3847_v63 = vcombine.low %v116_v56, %v120_v57  ;;  %v4362_v25 = vld [vmem:[#allocation2 + $0x20] ss:$8 sps:$4 sm:$0xff]   ;;  %v4379_v32 = vld [vmem:[#allocation2 + $0x104] ss:$8 sps:$4 sm:$0xff]  }
  0x3b   :  { %v112_v61 = vld [vmem:[%s5529_s24 + $0x38] sm:$0xff]  ;;  %v4374_v33 = vld [vmem:[#allocation2] ss:$8 sps:$4 sm:$0xff]  }
  0x3c   :  { %v3840_v1 = vcombine.high %v108_v60, %v112_v61  ;;  %v3839_v2 = vcombine.low %v108_v60, %v112_v61  ;;  %v4332_v3 = vld [vmem:[#allocation2 + $0x70] ss:$8 sps:$4 sm:$0xff]   ;;  %v4334_v4 = vld [vmem:[#allocation2 + $0x74] ss:$8 sps:$4 sm:$0xff]   ;;  %v4377_v34 = vld [vmem:[#allocation2 + $0x100] ss:$8 sps:$4 sm:$0xff]  }
  0x3d   :  { %358 = vmatpush1.bf16.msra.mxu1 %v3833_v31  ;;  %440 = vmatpush1.bf16.msra.mxu0 %v3837_v42  ;;  %v4335_v5 = vld [vmem:[#allocation2 + $0x170] ss:$8 sps:$4 sm:$0xff]   ;;  %v4337_v6 = vld [vmem:[#allocation2 + $0x174] ss:$8 sps:$4 sm:$0xff]   ;;  %v4376_v31 = vld [vmem:[#allocation2 + $0x4] ss:$8 sps:$4 sm:$0xff]  }
  0x3e   :  { %392 = vmatprep.subr.bf16.mxu1 %v3860_v35  ;;  %1452 = vmatprep.subr.bf16.mxu0 %v4334_v4  ;;  %v4346_v11 = vld [vmem:[#allocation2 + $0x54] ss:$8 sps:$4 sm:$0xff]   ;;  %v4344_v13 = vld [vmem:[#allocation2 + $0x50] ss:$8 sps:$4 sm:$0xff]   ;;  %v139_v35 = vlaneseq }
  0x3f   :  { %v4349_v12 = vld [vmem:[#allocation2 + $0x154] ss:$8 sps:$4 sm:$0xff]   ;;  %v4347_v14 = vld [vmem:[#allocation2 + $0x150] ss:$8 sps:$4 sm:$0xff]  }
  0x40   :  { %3865 = vmatmul.mubr.msk.bf16.vlgmr.msra.gmra.mxu1 %vm339_vm0, %v104_v37  ;;  %3867 = vmatmul.mubr.msk.bf16.vlgmr.msra.gmra.mxu0 %vm339_vm0, %v104_v37  ;;  %v4358_v19 = vld [vmem:[#allocation2 + $0x34] ss:$8 sps:$4 sm:$0xff]   ;;  %v4356_v21 = vld [vmem:[#allocation2 + $0x30] ss:$8 sps:$4 sm:$0xff]  }
  0x41   :  { %393 = vmatpush1.bf16.msra.mxu1 %v3859_v38  ;;  %416 = vmatprep.mubr.bf16.mxu1 %v4714_v0  ;;  %v4361_v20 = vld [vmem:[#allocation2 + $0x134] ss:$8 sps:$4 sm:$0xff]   ;;  %v4359_v22 = vld [vmem:[#allocation2 + $0x130] ss:$8 sps:$4 sm:$0xff]  }
  0x42   :  { %394 = vmatprep.subr.bf16.mxu1 %v3852_v41  ;;  %1453 = vmatpush1.bf16.msra.mxu0 %v4332_v3  ;;  %v4370_v27 = vld [vmem:[#allocation2 + $0x14] ss:$8 sps:$4 sm:$0xff]   ;;  %v4368_v29 = vld [vmem:[#allocation2 + $0x10] ss:$8 sps:$4 sm:$0xff]  }
  0x43   :  { %1454 = vmatprep.subr.bf16.mxu0 %v4340_v7  ;;  %v4373_v28 = vld [vmem:[#allocation2 + $0x114] ss:$8 sps:$4 sm:$0xff]   ;;  %v4371_v30 = vld [vmem:[#allocation2 + $0x110] ss:$8 sps:$4 sm:$0xff]  }
  0x45   :  { %395 = vmatpush1.bf16.msra.mxu1 %v3851_v43  ;;  %v137_v43 = vld [vmem:[%s5531_s6] sm:$0xff] }
  0x46   :  { %396 = vmatprep.subr.bf16.mxu1 %v3844_v46  ;;  %1455 = vmatpush1.bf16.msra.mxu0 %v4338_v9 }
  0x47   :  { %1456 = vmatprep.subr.bf16.mxu0 %v4346_v11 }
  0x49   :  { %397 = vmatpush1.bf16.msra.mxu1 %v3843_v47 }
  0x4a   :  { %398 = vmatprep.subr.bf16.mxu1 %v3836_v50  ;;  %1457 = vmatpush1.bf16.msra.mxu0 %v4344_v13 }
  0x4b   :  { %1458 = vmatprep.subr.bf16.mxu0 %v4352_v15 }
  0x4d   :  { %399 = vmatpush1.bf16.msra.mxu1 %v3835_v51 }
  0x4e   :  { %474 = vmatprep.subr.bf16.mxu1 %v3864_v54  ;;  %1459 = vmatpush1.bf16.msra.mxu0 %v4350_v17 }
  0x4f   :  { %1460 = vmatprep.subr.bf16.mxu0 %v4358_v19 }
  0x50   :  { %3866 = vmatmul.mubr.msk.bf16.vlgmr.msra.gmra.mxu1 %vm339_vm0, %v104_v37 }
  0x51   :  { %475 = vmatpush1.bf16.msra.mxu1 %v3863_v55  ;;  %498 = vmatprep.mubr.bf16.mxu1 %v4714_v0 }
  0x52   :  { %476 = vmatprep.subr.bf16.mxu1 %v3856_v58  ;;  %1461 = vmatpush1.bf16.msra.mxu0 %v4356_v21 }
  0x53   :  { %1462 = vmatprep.subr.bf16.mxu0 %v4364_v23 }
  0x55   :  { %477 = vmatpush1.bf16.msra.mxu1 %v3855_v59 }
  0x56   :  { %478 = vmatprep.subr.bf16.mxu1 %v3848_v62  ;;  %1463 = vmatpush1.bf16.msra.mxu0 %v4362_v25 }
  0x57   :  { %1464 = vmatprep.subr.bf16.mxu0 %v4370_v27 }
  0x59   :  { %479 = vmatpush1.bf16.msra.mxu1 %v3847_v63 }
  0x5a   :  { %480 = vmatprep.subr.bf16.mxu1 %v3840_v1  ;;  %1465 = vmatpush1.bf16.msra.mxu0 %v4368_v29 }
  0x5b   :  { %1466 = vmatprep.subr.bf16.mxu0 %v4376_v31 }
  0x5d   :  { %481 = vmatpush1.bf16.msra.mxu1 %v3839_v2 }
  0x5e   :  { %1493 = vmatprep.subr.bf16.mxu1 %v4337_v6  ;;  %1467 = vmatpush1.bf16.msra.mxu0 %v4374_v33 }
  0x60   :  { %3868 = vmatmul.mubr.msk.bf16.vlgmr.msra.gmra.mxu1 %vm339_vm0, %v104_v37  ;;  %v140_v37 = vshrl.u32 %v139_v35, 7 }
  0x61   :  { %1494 = vmatpush1.bf16.msra.mxu1 %v4335_v5 }
  0x62   :  { %1495 = vmatprep.subr.bf16.mxu1 %v4343_v8  ;;  %v4951_v40 = vsub.s32 0, %v140_v37  ;;  %v4953_v41 = vsub.s32 1, %v140_v37  ;;  %v4960_v48 = vsub.s32 2, %v140_v37  ;;  %v4962_v50 = vsub.s32 3, %v140_v37 }
  0x63   :  { %v4969_v55 = vsub.s32 4, %v140_v37  ;;  %v4985_v3 = vsub.s32 5, %v140_v37  ;;  %v4994_v13 = vsub.s32 6, %v140_v37  ;;  %v5000_v17 = vsub.s32 7, %v140_v37  ;;  %v4380_v37 = vld [vmem:[#allocation2 + $0xf0] ss:$8 sps:$4 sm:$0xff]  }
  0x64   :  { %v142_v46 = vrot.slane %v137_v43, %v4951_v40  ;;  %v146_v47 = vrot.slane %v137_v43, %v4953_v41  ;;  %v150_v54 = vrot.slane %v137_v43, %v4960_v48  ;;  %v154_v56 = vrot.slane %v137_v43, %v4962_v50 }
  0x65   :  { %1496 = vmatpush1.bf16.msra.mxu1 %v4341_v10  ;;  %v158_v62 = vrot.slane %v137_v43, %v4969_v55  ;;  %v162_v11 = vrot.slane %v137_v43, %v4985_v3  ;;  %v166_v19 = vrot.slane %v137_v43, %v4994_v13 }
  0x66   :  { %1497 = vmatprep.subr.bf16.mxu1 %v4349_v12 }
  0x69   :  { %1498 = vmatpush1.bf16.msra.mxu1 %v4347_v14 }
  0x6a   :  { %1499 = vmatprep.subr.bf16.mxu1 %v4355_v16 }
  0x6d   :  { %1500 = vmatpush1.bf16.msra.mxu1 %v4353_v18 }
  0x6e   :  { %1501 = vmatprep.subr.bf16.mxu1 %v4361_v20 }
  0x71   :  { %1502 = vmatpush1.bf16.msra.mxu1 %v4359_v22  ;;  %v170_v22 = vrot.slane %v137_v43, %v5000_v17  ;;  %v4388_v43 = vld [vmem:[#allocation2 + $0xe4] ss:$8 sps:$4 sm:$0xff]  }
  0x72   :  { %1503 = vmatprep.subr.bf16.mxu1 %v4367_v24 }
  0x75   :  { %1504 = vmatpush1.bf16.msra.mxu1 %v4365_v26 }
  0x76   :  { %1505 = vmatprep.subr.bf16.mxu1 %v4373_v28 }
  0x79   :  { %1506 = vmatpush1.bf16.msra.mxu1 %v4371_v30 }
  0x7a   :  { %1507 = vmatprep.subr.bf16.mxu1 %v4379_v32 }
  0x7d   :  { %1508 = vmatpush1.bf16.msra.mxu1 %v4377_v34 }
 0x100   :  { %v377_v36 = vpop.f32.mrf.mxu1  ;;  %v459_v42 = vpop.f32.mrf.mxu0 }
 0x101   :  { %v4964_v52 = vadd.f32 %v377_v36, %v142_v46  ;;  %v4990_v10 = vadd.f32 %v459_v42, %v158_v62  ;;  %v4385_v42 = vld [vmem:[#allocation2 + $0x1f4] ss:$8 sps:$4 sm:$0xff]   ;;  %v4389_v46 = vld [vmem:[#allocation2 + $0x1e0] ss:$8 sps:$4 sm:$0xff]  }
 0x102   :  { %v379_v38 = vpop.f32.mrf.mxu1  ;;  %v461_v45 = vpop.f32.mrf.mxu0  ;;  %1509 = vmatprep.subr.bf16.mxu1 %v4385_v42  ;;  %v4409_v62 = vld [vmem:[#allocation2 + $0x1b4] ss:$8 sps:$4 sm:$0xff]  }
 0x103   :  { %v4966_v53 = vadd.f32 %v379_v38, %v146_v47  ;;  %v518_v58 = vmul.f32 %v4964_v52, %v4964_v52  ;;  %v522_v15 = vmul.f32 %v4990_v10, %v4990_v10  ;;  %v4998_v16 = vadd.f32 %v461_v45, %v162_v11  ;;  %v4382_v38 = vld [vmem:[#allocation2 + $0xf4] ss:$8 sps:$4 sm:$0xff]   ;;  %v4386_v45 = vld [vmem:[#allocation2 + $0xe0] ss:$8 sps:$4 sm:$0xff]   ;;  %v4416_v11 = vld [vmem:[#allocation2 + $0x90] ss:$8 sps:$4 sm:$0xff]  }
 0x104   :  { %v381_v39 = vpop.f32.mrf.mxu1  ;;  %v463_v49 = vpop.f32.mrf.mxu0  ;;  %1468 = vmatprep.subr.bf16.mxu0 %v4382_v38  ;;  %v4394_v47 = vld [vmem:[#allocation2 + $0xd4] ss:$8 sps:$4 sm:$0xff]  }
 0x105   :  { %v519_v59 = vmul.f32 %v4966_v53, %v4966_v53  ;;  %v507_v63 = vadd.f32 %v4966_v53, %v4964_v52  ;;  %v523_v21 = vmul.f32 %v4998_v16, %v4998_v16  ;;  %v4383_v39 = vld [vmem:[#allocation2 + $0x1f0] ss:$8 sps:$4 sm:$0xff]   ;;  %1469 = vmatpush2.bf16.msra.mxu0 %v4380_v37  ;;  %v4397_v49 = vld [vmem:[#allocation2 + $0x1d4] ss:$8 sps:$4 sm:$0xff]  }
 0x106   :  { %v382_v44 = vpop.f32.mrf.mxu1  ;;  %v464_v51 = vpop.f32.mrf.mxu0  ;;  %1510 = vmatpush2.bf16.msra.mxu1 %v4383_v39  ;;  %1470 = vmatprep.subr.bf16.mxu0 %v4388_v43 }
 0x107   :  { %v526_v5 = vadd.f32 %v519_v59, %v518_v58  ;;  %v4391_v44 = vld [vmem:[#allocation2 + $0x1e4] ss:$8 sps:$4 sm:$0xff]   ;;  %v4392_v51 = vld [vmem:[#allocation2 + $0xd0] ss:$8 sps:$4 sm:$0xff]   ;;  %v4401_v59 = vld [vmem:[#allocation2 + $0x1c0] ss:$8 sps:$4 sm:$0xff]  }
 0x108   :  { %1511 = vmatprep.subr.bf16.mxu1 %v4391_v44  ;;  %v4403_v58 = vld [vmem:[#allocation2 + $0x1c4] ss:$8 sps:$4 sm:$0xff]  }
 0x109   :  { %1471 = vmatpush2.bf16.msra.mxu0 %v4386_v45 }
 0x10a   :  { %1512 = vmatpush2.bf16.msra.mxu1 %v4389_v46  ;;  %1472 = vmatprep.subr.bf16.mxu0 %v4394_v47 }
 0x10b   :  { %1513 = vmatprep.subr.bf16.mxu1 %v4397_v49 }
 0x10d   :  { %1473 = vmatpush2.bf16.msra.mxu0 %v4392_v51 }
 0x110   :  { %v418_v57 = vpop.f32.mrf.mxu1 }
 0x111   :  { %v4976_v60 = vadd.f32 %v418_v57, %v150_v54  ;;  %v4395_v54 = vld [vmem:[#allocation2 + $0x1d0] ss:$8 sps:$4 sm:$0xff]   ;;  %v4398_v57 = vld [vmem:[#allocation2 + $0xc0] ss:$8 sps:$4 sm:$0xff]  }
 0x112   :  { %v420_v61 = vpop.f32.mrf.mxu1  ;;  %1514 = vmatpush2.bf16.msra.mxu1 %v4395_v54 }
 0x113   :  { %v520_v1 = vmul.f32 %v4976_v60, %v4976_v60  ;;  %v4983_v2 = vadd.f32 %v420_v61, %v154_v56  ;;  %v508_v6 = vadd.f32 %v507_v63, %v4976_v60  ;;  %v4400_v56 = vld [vmem:[#allocation2 + $0xc4] ss:$8 sps:$4 sm:$0xff]   ;;  %v4406_v61 = vld [vmem:[#allocation2 + $0xb4] ss:$8 sps:$4 sm:$0xff]   ;;  %1515 = vmatprep.subr.bf16.mxu1 %v4403_v58  ;;  %v4404_v63 = vld [vmem:[#allocation2 + $0xb0] ss:$8 sps:$4 sm:$0xff]  }
 0x114   :  { %v422_v4 = vpop.f32.mrf.mxu1  ;;  %1474 = vmatprep.subr.bf16.mxu0 %v4400_v56 }
 0x115   :  { %v527_v8 = vadd.f32 %v526_v5, %v520_v1  ;;  %v521_v9 = vmul.f32 %v4983_v2, %v4983_v2  ;;  %v509_v12 = vadd.f32 %v508_v6, %v4983_v2  ;;  %1475 = vmatpush2.bf16.msra.mxu0 %v4398_v57  ;;  %v4407_v1 = vld [vmem:[#allocation2 + $0x1b0] ss:$8 sps:$4 sm:$0xff]   ;;  %v4412_v4 = vld [vmem:[#allocation2 + $0xa4] ss:$8 sps:$4 sm:$0xff]   ;;  %v4410_v6 = vld [vmem:[#allocation2 + $0xa0] ss:$8 sps:$4 sm:$0xff]  }
 0x116   :  { %v423_v7 = vpop.f32.mrf.mxu1  ;;  %1516 = vmatpush2.bf16.msra.mxu1 %v4401_v59  ;;  %1476 = vmatprep.subr.bf16.mxu0 %v4406_v61  ;;  %v4415_v5 = vld [vmem:[#allocation2 + $0x1a4] ss:$8 sps:$4 sm:$0xff]  }
 0x117   :  { %v528_v14 = vadd.f32 %v527_v8, %v521_v9  ;;  %v510_v18 = vadd.f32 %v509_v12, %v4990_v10  ;;  %1517 = vmatprep.subr.bf16.mxu1 %v4409_v62  ;;  %v4413_v7 = vld [vmem:[#allocation2 + $0x1a0] ss:$8 sps:$4 sm:$0xff]   ;;  %v4418_v8 = vld [vmem:[#allocation2 + $0x94] ss:$8 sps:$4 sm:$0xff]   ;;  %v4419_v12 = vld [vmem:[#allocation2 + $0x190] ss:$8 sps:$4 sm:$0xff]  }
 0x118   :  { %v4421_v9 = vld [vmem:[#allocation2 + $0x194] ss:$8 sps:$4 sm:$0xff]  }
 0x119   :  { %v529_v20 = vadd.f32 %v528_v14, %v522_v15  ;;  %v511_v25 = vadd.f32 %v510_v18, %v4998_v16  ;;  %1477 = vmatpush2.bf16.msra.mxu0 %v4404_v63  ;;  %v4424_v14 = vld [vmem:[#allocation2 + $0x84] ss:$8 sps:$4 sm:$0xff]   ;;  %v4422_v18 = vld [vmem:[#allocation2 + $0x80] ss:$8 sps:$4 sm:$0xff]  }
 0x11a   :  { %1518 = vmatpush2.bf16.msra.mxu1 %v4407_v1  ;;  %1478 = vmatprep.subr.bf16.mxu0 %v4412_v4  ;;  %v4427_v15 = vld [vmem:[#allocation2 + $0x184] ss:$8 sps:$4 sm:$0xff]  }
 0x11b   :  { %v530_v30 = vadd.f32 %v529_v20, %v523_v21  ;;  %1519 = vmatprep.subr.bf16.mxu1 %v4415_v5  ;;  %v4430_v20 = vld [vmem:[#allocation2 + $0x274] ss:$8 sps:$4 sm:$0xff]  }
 0x11c   :  { %v4433_v21 = vld [vmem:[#allocation2 + $0x374] ss:$8 sps:$4 sm:$0xff]  }
 0x11d   :  { %1479 = vmatpush2.bf16.msra.mxu0 %v4410_v6 }
 0x11e   :  { %1520 = vmatpush2.bf16.msra.mxu1 %v4413_v7  ;;  %1480 = vmatprep.subr.bf16.mxu0 %v4418_v8 }
 0x11f   :  { %1521 = vmatprep.subr.bf16.mxu1 %v4421_v9 }
 0x120   :  { %v500_v23 = vpop.f32.mrf.mxu1 }
 0x121   :  { %v5007_v24 = vadd.f32 %v500_v23, %v166_v19  ;;  %1481 = vmatpush2.bf16.msra.mxu0 %v4416_v11  ;;  %v4425_v19 = vld [vmem:[#allocation2 + $0x180] ss:$8 sps:$4 sm:$0xff]  }
 0x122   :  { %v502_v26 = vpop.f32.mrf.mxu1  ;;  %1522 = vmatpush2.bf16.msra.mxu1 %v4419_v12  ;;  %1482 = vmatprep.subr.bf16.mxu0 %v4424_v14 }
 0x123   :  { %v524_v27 = vmul.f32 %v5007_v24, %v5007_v24  ;;  %v5012_v28 = vadd.f32 %v502_v26, %v170_v22  ;;  %v512_v29 = vadd.f32 %v511_v25, %v5007_v24  ;;  %1523 = vmatprep.subr.bf16.mxu1 %v4427_v15 }
 0x124   :  { %v504_v31 = vpop.f32.mrf.mxu1 }
 0x125   :  { %v513_v32 = vadd.f32 %v512_v29, %v5012_v28  ;;  %v525_v33 = vmul.f32 %v5012_v28, %v5012_v28  ;;  %v531_v34 = vadd.f32 %v530_v30, %v524_v27  ;;  %1483 = vmatpush2.bf16.msra.mxu0 %v4422_v18  ;;  %v556_v31 = vld [vmem:[%s5532_s28] sm:$0xff] }
 0x126   :  { %v505_v35 = vpop.f32.mrf.mxu1  ;;  %1524 = vmatpush2.bf16.msra.mxu1 %v4425_v19  ;;  %1534 = vmatprep.subr.bf16.mxu0 %v4430_v20  ;;  %v581_v38 = vrot.slane %v556_v31, %v4985_v3  ;;  %v589_v39 = vrot.slane %v556_v31, %v5000_v17  ;;  %v577_v42 = vrot.slane %v556_v31, %v4969_v55 }
 0x127   :  { %514 = vadd.xlane.f32.xlu0 %v513_v32  ;;  %v532_v36 = vadd.f32 %v531_v34, %v525_v33  ;;  %1575 = vmatprep.subr.bf16.mxu1 %v4433_v21  ;;  %v606_v32 = vld [vmem:[%s5533_s0] sm:$0xff]  ;;  %v565_v33 = vrot.slane %v556_v31, %v4953_v41  ;;  %v573_v34 = vrot.slane %v556_v31, %v4962_v50 }
 0x128   :  { %v561_v35 = vrot.slane %v556_v31, %v4951_v40  ;;  %v615_v37 = vrot.slane %v606_v32, %v4953_v41  ;;  %v623_v43 = vrot.slane %v606_v32, %v4962_v50  ;;  %v611_v44 = vrot.slane %v606_v32, %v4951_v40 }
 0x129   :  { %v619_v45 = vrot.slane %v606_v32, %v4960_v48  ;;  %v585_v46 = vrot.slane %v556_v31, %v4994_v13  ;;  %v631_v47 = vrot.slane %v606_v32, %v4985_v3  ;;  %v639_v49 = vrot.slane %v606_v32, %v5000_v17 }
 0x12a   :  { %v627_v51 = vrot.slane %v606_v32, %v4969_v55  ;;  %v635_v54 = vrot.slane %v606_v32, %v4994_v13 }
 0x12b   :  { %533 = vadd.xlane.f32.xlu0 %v532_v36  ;;  %v569_v36 = vrot.slane %v556_v31, %v4960_v48 }
 0x1b0   :  { %v515_v22 = vpop.xlane.xlu0 %514 }
 0x1b1   :  { %v517_v23 = vmul.f32 0.0009765625, %v515_v22 }
 0x1b3   :  { %v536_v26 = vmul.f32 %v517_v23, %v517_v23  ;;  %v539_v56 = vsub.f32 %v4966_v53, %v517_v23  ;;  %v541_v57 = vsub.f32 %v4983_v2, %v517_v23  ;;  %v538_v58 = vsub.f32 %v4964_v52, %v517_v23 }
 0x1b4   :  { %v534_v25 = vpop.xlane.xlu0 %533  ;;  %v540_v59 = vsub.f32 %v4976_v60, %v517_v23  ;;  %v543_v62 = vsub.f32 %v4998_v16, %v517_v23  ;;  %v545_v63 = vsub.f32 %v5012_v28, %v517_v23  ;;  %v542_v1 = vsub.f32 %v4990_v10, %v517_v23 }
 0x1b5   :  { %v535_v27 = vmul.f32 0.0009765625, %v534_v25  ;;  %v544_v4 = vsub.f32 %v5007_v24, %v517_v23 }
 0x1b7   :  { %v537_v29 = vsub.f32 %v535_v27, %v536_v26 }
 0x1b9   :  { %v546_v30 = vadd.f32 1e-05, %v537_v29 }
 0x1bb   :  { %4610 = vrsqrt.f32 %v546_v30 }
 0x1c8   :  { %v4611_v61 = vpop.eup %4610 }
 0x1c9   :  { %v549_v5 = vmul.f32 %v4611_v61, %v539_v56  ;;  %v551_v6 = vmul.f32 %v4611_v61, %v541_v57  ;;  %v548_v7 = vmul.f32 %v4611_v61, %v538_v58  ;;  %v550_v8 = vmul.f32 %v4611_v61, %v540_v59  ;;  %v4448_v56 = vld [vmem:[#allocation2 + $0x244] ss:$8 sps:$4 sm:$0xff]   ;;  %v4446_v58 = vld [vmem:[#allocation2 + $0x240] ss:$8 sps:$4 sm:$0xff]  }
 0x1ca   :  { %v553_v53 = vmul.f32 %v4611_v61, %v543_v62  ;;  %v555_v9 = vmul.f32 %v4611_v61, %v545_v63  ;;  %v552_v2 = vmul.f32 %v4611_v61, %v542_v1  ;;  %v554_v11 = vmul.f32 %v4611_v61, %v544_v4  ;;  %v4451_v57 = vld [vmem:[#allocation2 + $0x344] ss:$8 sps:$4 sm:$0xff]   ;;  %v4449_v59 = vld [vmem:[#allocation2 + $0x340] ss:$8 sps:$4 sm:$0xff]   ;;  %v4454_v61 = vld [vmem:[#allocation2 + $0x234] ss:$8 sps:$4 sm:$0xff]  }
 0x1cb   :  { %v599_v52 = vmul.f32 %v565_v33, %v549_v5  ;;  %v601_v12 = vmul.f32 %v573_v34, %v551_v6  ;;  %v598_v60 = vmul.f32 %v561_v35, %v548_v7  ;;  %v600_v14 = vmul.f32 %v569_v36, %v550_v8  ;;  %v4428_v35 = vld [vmem:[#allocation2 + $0x270] ss:$8 sps:$4 sm:$0xff]   ;;  %v4457_v62 = vld [vmem:[#allocation2 + $0x334] ss:$8 sps:$4 sm:$0xff]   ;;  %v4460_v4 = vld [vmem:[#allocation2 + $0x224] ss:$8 sps:$4 sm:$0xff]  }
 0x1cc   :  { %v603_v15 = vmul.f32 %v581_v38, %v553_v53  ;;  %v605_v16 = vmul.f32 %v589_v39, %v555_v9  ;;  %v602_v18 = vmul.f32 %v577_v42, %v552_v2  ;;  %v604_v28 = vmul.f32 %v585_v46, %v554_v11  ;;  %v4431_v36 = vld [vmem:[#allocation2 + $0x370] ss:$8 sps:$4 sm:$0xff]   ;;  %v4436_v39 = vld [vmem:[#allocation2 + $0x264] ss:$8 sps:$4 sm:$0xff]   ;;  %v4437_v46 = vld [vmem:[#allocation2 + $0x360] ss:$8 sps:$4 sm:$0xff]  }
 0x1cd   :  { %v649_v19 = vadd.f32 %v615_v37, %v599_v52  ;;  %v651_v10 = vadd.f32 %v623_v43, %v601_v12  ;;  %v648_v20 = vadd.f32 %v611_v44, %v598_v60  ;;  %v650_v24 = vadd.f32 %v619_v45, %v600_v14  ;;  %v4439_v42 = vld [vmem:[#allocation2 + $0x364] ss:$8 sps:$4 sm:$0xff]   ;;  %v4434_v45 = vld [vmem:[#allocation2 + $0x260] ss:$8 sps:$4 sm:$0xff]   ;;  %v4452_v63 = vld [vmem:[#allocation2 + $0x230] ss:$8 sps:$4 sm:$0xff]  }
 0x1ce   :  { %v653_v21 = vadd.f32 %v631_v47, %v603_v15  ;;  %v655_v22 = vadd.f32 %v639_v49, %v605_v16  ;;  %v5048_v23 = vadd.f32 %v627_v51, %v602_v18  ;;  %v5050_v25 = vadd.f32 %v635_v54, %v604_v28  ;;  %v4442_v47 = vld [vmem:[#allocation2 + $0x254] ss:$8 sps:$4 sm:$0xff]   ;;  %v4440_v51 = vld [vmem:[#allocation2 + $0x250] ss:$8 sps:$4 sm:$0xff]   ;;  %v4463_v5 = vld [vmem:[#allocation2 + $0x324] ss:$8 sps:$4 sm:$0xff]  }
 0x1cf   :  { %v657_v26 = vmax.f32 %v649_v19, 0.0  ;;  %v659_v27 = vmax.f32 %v651_v10, 0.0  ;;  %v656_v29 = vmax.f32 %v648_v20, 0.0  ;;  %v658_v30 = vmax.f32 %v650_v24, 0.0  ;;  %v4445_v49 = vld [vmem:[#allocation2 + $0x354] ss:$8 sps:$4 sm:$0xff]  }
 0x1d0   :  { %v661_v31 = vmax.f32 %v653_v21, 0.0  ;;  %v663_v32 = vmax.f32 %v655_v22, 0.0  ;;  %v4443_v54 = vld [vmem:[#allocation2 + $0x350] ss:$8 sps:$4 sm:$0xff]   ;;  %v4458_v6 = vld [vmem:[#allocation2 + $0x220] ss:$8 sps:$4 sm:$0xff]  }
 0x1d1   :  { %v665_v33 = vpack.c.bf16 %v657_v26, %v657_v26  ;;  %v667_v34 = vpack.c.bf16 %v659_v27, %v659_v27  ;;  %v664_v37 = vpack.c.bf16 %v656_v29, %v656_v29  ;;  %v666_v38 = vpack.c.bf16 %v658_v30, %v658_v30  ;;  %v4455_v1 = vld [vmem:[#allocation2 + $0x330] ss:$8 sps:$4 sm:$0xff]   ;;  %v4461_v7 = vld [vmem:[#allocation2 + $0x320] ss:$8 sps:$4 sm:$0xff]   ;;  %v4466_v8 = vld [vmem:[#allocation2 + $0x214] ss:$8 sps:$4 sm:$0xff]  }
 0x1d2   :  { %v669_v43 = vpack.c.bf16 %v661_v31, %v661_v31  ;;  %v671_v44 = vpack.c.bf16 %v663_v32, %v663_v32  ;;  %v4469_v53 = vld [vmem:[#allocation2 + $0x314] ss:$8 sps:$4 sm:$0xff]   ;;  %v4464_v9 = vld [vmem:[#allocation2 + $0x210] ss:$8 sps:$4 sm:$0xff]   ;;  %v4472_v11 = vld [vmem:[#allocation2 + $0x204] ss:$8 sps:$4 sm:$0xff]  }
 0x1d3   :  { %1484 = vmatprep.mubr.bf16.mxu0 %v665_v33  ;;  %1525 = vmatprep.mubr.bf16.mxu1 %v667_v34  ;;  %v4467_v2 = vld [vmem:[#allocation2 + $0x310] ss:$8 sps:$4 sm:$0xff]   ;;  %v4475_v52 = vld [vmem:[#allocation2 + $0x304] ss:$8 sps:$4 sm:$0xff]   ;;  %v4470_v12 = vld [vmem:[#allocation2 + $0x200] ss:$8 sps:$4 sm:$0xff]  }
 0x1d4   :  { %1485 = vmatmul.mubr.bf16.vlgmr.msra.gmra.mxu0 %v664_v37  ;;  %1526 = vmatmul.mubr.bf16.vlgmr.msra.gmra.mxu1 %v666_v38  ;;  %v4473_v60 = vld [vmem:[#allocation2 + $0x300] ss:$8 sps:$4 sm:$0xff]   ;;  %v4478_v14 = vld [vmem:[#allocation2 + $0x2f4] ss:$8 sps:$4 sm:$0xff]   ;;  %v4476_v16 = vld [vmem:[#allocation2 + $0x2f0] ss:$8 sps:$4 sm:$0xff]  }
 0x1d5   :  { %1535 = vmatpush1.bf16.msra.mxu0 %v4428_v35  ;;  %1576 = vmatpush1.bf16.msra.mxu1 %v4431_v36  ;;  %v4481_v15 = vld [vmem:[#allocation2 + $0x3f4] ss:$8 sps:$4 sm:$0xff]   ;;  %v4479_v18 = vld [vmem:[#allocation2 + $0x3f0] ss:$8 sps:$4 sm:$0xff]   ;;  %v4484_v28 = vld [vmem:[#allocation2 + $0x2e4] ss:$8 sps:$4 sm:$0xff]  }
 0x1d6   :  { %1566 = vmatprep.mubr.bf16.mxu0 %v669_v43  ;;  %1607 = vmatprep.mubr.bf16.mxu1 %v671_v44  ;;  %v4487_v19 = vld [vmem:[#allocation2 + $0x3e4] ss:$8 sps:$4 sm:$0xff]   ;;  %v4482_v10 = vld [vmem:[#allocation2 + $0x2e0] ss:$8 sps:$4 sm:$0xff]   ;;  %v4490_v24 = vld [vmem:[#allocation2 + $0x2d4] ss:$8 sps:$4 sm:$0xff]  }
 0x1d7   :  { %1536 = vmatprep.subr.bf16.mxu0 %v4436_v39  ;;  %1577 = vmatprep.subr.bf16.mxu1 %v4439_v42  ;;  %v4485_v20 = vld [vmem:[#allocation2 + $0x3e0] ss:$8 sps:$4 sm:$0xff]   ;;  %v4493_v21 = vld [vmem:[#allocation2 + $0x3d4] ss:$8 sps:$4 sm:$0xff]   ;;  %v4488_v22 = vld [vmem:[#allocation2 + $0x2d0] ss:$8 sps:$4 sm:$0xff]  }
 0x1d8   :  { %v4491_v26 = vld [vmem:[#allocation2 + $0x3d0] ss:$8 sps:$4 sm:$0xff]   ;;  %v4496_v27 = vld [vmem:[#allocation2 + $0x2c4] ss:$8 sps:$4 sm:$0xff]   ;;  %v4494_v30 = vld [vmem:[#allocation2 + $0x2c0] ss:$8 sps:$4 sm:$0xff]  }
 0x1d9   :  { %1537 = vmatpush1.bf16.msra.mxu0 %v4434_v45  ;;  %1578 = vmatpush1.bf16.msra.mxu1 %v4437_v46  ;;  %v4499_v29 = vld [vmem:[#allocation2 + $0x3c4] ss:$8 sps:$4 sm:$0xff]   ;;  %v4497_v31 = vld [vmem:[#allocation2 + $0x3c0] ss:$8 sps:$4 sm:$0xff]   ;;  %v4502_v32 = vld [vmem:[#allocation2 + $0x2b4] ss:$8 sps:$4 sm:$0xff]  }
 0x1da   :  { %1538 = vmatprep.subr.bf16.mxu0 %v4442_v47  ;;  %1579 = vmatprep.subr.bf16.mxu1 %v4445_v49  ;;  %v4505_v33 = vld [vmem:[#allocation2 + $0x3b4] ss:$8 sps:$4 sm:$0xff]   ;;  %v4500_v34 = vld [vmem:[#allocation2 + $0x2b0] ss:$8 sps:$4 sm:$0xff]   ;;  %v4508_v36 = vld [vmem:[#allocation2 + $0x2a4] ss:$8 sps:$4 sm:$0xff]  }
 0x1db   :  { %v4503_v35 = vld [vmem:[#allocation2 + $0x3b0] ss:$8 sps:$4 sm:$0xff]   ;;  %v4511_v37 = vld [vmem:[#allocation2 + $0x3a4] ss:$8 sps:$4 sm:$0xff]   ;;  %v4506_v38 = vld [vmem:[#allocation2 + $0x2a0] ss:$8 sps:$4 sm:$0xff]  }
 0x1dc   :  { %v4509_v39 = vld [vmem:[#allocation2 + $0x3a0] ss:$8 sps:$4 sm:$0xff]   ;;  %v4514_v42 = vld [vmem:[#allocation2 + $0x294] ss:$8 sps:$4 sm:$0xff]   ;;  %v4512_v44 = vld [vmem:[#allocation2 + $0x290] ss:$8 sps:$4 sm:$0xff]  }
 0x1dd   :  { %1539 = vmatpush1.bf16.msra.mxu0 %v4440_v51  ;;  %1580 = vmatpush1.bf16.msra.mxu1 %v4443_v54  ;;  %v4517_v43 = vld [vmem:[#allocation2 + $0x394] ss:$8 sps:$4 sm:$0xff]   ;;  %v4515_v45 = vld [vmem:[#allocation2 + $0x390] ss:$8 sps:$4 sm:$0xff]   ;;  %v4520_v46 = vld [vmem:[#allocation2 + $0x284] ss:$8 sps:$4 sm:$0xff]  }
 0x1de   :  { %1540 = vmatprep.subr.bf16.mxu0 %v4448_v56  ;;  %1581 = vmatprep.subr.bf16.mxu1 %v4451_v57  ;;  %v4523_v47 = vld [vmem:[#allocation2 + $0x384] ss:$8 sps:$4 sm:$0xff]   ;;  %v4518_v49 = vld [vmem:[#allocation2 + $0x280] ss:$8 sps:$4 sm:$0xff]   ;;  %v660_v54 = vmax.f32 %v5048_v23, 0.0  ;;  %v662_v56 = vmax.f32 %v5050_v25, 0.0 }
 0x1df   :  { %v4521_v51 = vld [vmem:[#allocation2 + $0x380] ss:$8 sps:$4 sm:$0xff]  }
 0x1e0   :  { %v668_v57 = vpack.c.bf16 %v660_v54, %v660_v54  ;;  %v800_v23 = vld [vmem:[%s5534_s25] sm:$0x3] }
 0x1e1   :  { %1541 = vmatpush1.bf16.msra.mxu0 %v4446_v58  ;;  %1582 = vmatpush1.bf16.msra.mxu1 %v4449_v59  ;;  %v670_v58 = vpack.c.bf16 %v662_v56, %v662_v56  ;;  %v805_v25 = vrot.slane %v800_v23, %v4951_v40 }
 0x1e2   :  { %1542 = vmatprep.subr.bf16.mxu0 %v4454_v61  ;;  %1583 = vmatprep.subr.bf16.mxu1 %v4457_v62 }
 0x1e5   :  { %1543 = vmatpush1.bf16.msra.mxu0 %v4452_v63  ;;  %1584 = vmatpush1.bf16.msra.mxu1 %v4455_v1 }
 0x1e6   :  { %1544 = vmatprep.subr.bf16.mxu0 %v4460_v4  ;;  %1585 = vmatprep.subr.bf16.mxu1 %v4463_v5 }
 0x1e9   :  { %1545 = vmatpush1.bf16.msra.mxu0 %v4458_v6  ;;  %1586 = vmatpush1.bf16.msra.mxu1 %v4461_v7  ;;  %v809_v7 = vrot.slane %v800_v23, %v4953_v41 }
 0x1ea   :  { %1546 = vmatprep.subr.bf16.mxu0 %v4466_v8  ;;  %1587 = vmatprep.subr.bf16.mxu1 %v4469_v53 }
 0x1ed   :  { %1547 = vmatpush1.bf16.msra.mxu0 %v4464_v9  ;;  %1588 = vmatpush1.bf16.msra.mxu1 %v4467_v2 }
 0x1ee   :  { %1548 = vmatprep.subr.bf16.mxu0 %v4472_v11  ;;  %1589 = vmatprep.subr.bf16.mxu1 %v4475_v52 }
 0x1f1   :  { %1549 = vmatpush1.bf16.msra.mxu0 %v4470_v12  ;;  %1590 = vmatpush1.bf16.msra.mxu1 %v4473_v60 }
 0x1f2   :  { %1550 = vmatprep.subr.bf16.mxu0 %v4478_v14  ;;  %1591 = vmatprep.subr.bf16.mxu1 %v4481_v15 }
 0x1f5   :  { %1551 = vmatpush2.bf16.msra.mxu0 %v4476_v16  ;;  %1592 = vmatpush2.bf16.msra.mxu1 %v4479_v18 }
 0x1f6   :  { %1552 = vmatprep.subr.bf16.mxu0 %v4484_v28  ;;  %1593 = vmatprep.subr.bf16.mxu1 %v4487_v19 }
 0x1f9   :  { %1553 = vmatpush2.bf16.msra.mxu0 %v4482_v10  ;;  %1594 = vmatpush2.bf16.msra.mxu1 %v4485_v20 }
 0x1fa   :  { %1554 = vmatprep.subr.bf16.mxu0 %v4490_v24  ;;  %1595 = vmatprep.subr.bf16.mxu1 %v4493_v21 }
 0x1fd   :  { %1555 = vmatpush2.bf16.msra.mxu0 %v4488_v22  ;;  %1596 = vmatpush2.bf16.msra.mxu1 %v4491_v26  ;;  %v4524_v26 = vld [vmem:[%s5505_s10 + $0x78] sm:$0xff]  }
 0x1fe   :  { %1556 = vmatprep.subr.bf16.mxu0 %v4496_v27  ;;  %1597 = vmatprep.subr.bf16.mxu1 %v4499_v29  ;;  %v4525_v27 = vld [vmem:[%s5505_s10 + $0x38] sm:$0xff]   ;;  %v4526_v29 = vld [vmem:[%s5505_s10 + $0x70] sm:$0xff]  }
 0x201   :  { %1557 = vmatpush2.bf16.msra.mxu0 %v4494_v30  ;;  %1598 = vmatpush2.bf16.msra.mxu1 %v4497_v31  ;;  %v4527_v30 = vld [vmem:[%s5505_s10 + $0x30] sm:$0xff]   ;;  %v4528_v31 = vld [vmem:[%s5505_s10 + $0x68] sm:$0xff]  }
 0x202   :  { %1558 = vmatprep.subr.bf16.mxu0 %v4502_v32  ;;  %1599 = vmatprep.subr.bf16.mxu1 %v4505_v33  ;;  %v4529_v32 = vld [vmem:[%s5505_s10 + $0x28] sm:$0xff]   ;;  %v4530_v33 = vld [vmem:[%s5505_s10 + $0x60] sm:$0xff]  }
 0x205   :  { %1559 = vmatpush2.bf16.msra.mxu0 %v4500_v34  ;;  %1600 = vmatpush2.bf16.msra.mxu1 %v4503_v35  ;;  %v4531_v34 = vld [vmem:[%s5505_s10 + $0x20] sm:$0xff]   ;;  %v4532_v35 = vld [vmem:[%s5505_s10 + $0x58] sm:$0xff]  }
 0x206   :  { %1560 = vmatprep.subr.bf16.mxu0 %v4508_v36  ;;  %1601 = vmatprep.subr.bf16.mxu1 %v4511_v37  ;;  %v4533_v36 = vld [vmem:[%s5505_s10 + $0x18] sm:$0xff]   ;;  %v4534_v37 = vld [vmem:[%s5505_s10 + $0x50] sm:$0xff]  }
 0x209   :  { %1561 = vmatpush2.bf16.msra.mxu0 %v4506_v38  ;;  %1602 = vmatpush2.bf16.msra.mxu1 %v4509_v39  ;;  %v4535_v38 = vld [vmem:[%s5505_s10 + $0x10] sm:$0xff]   ;;  %v4536_v39 = vld [vmem:[%s5505_s10 + $0x48] sm:$0xff]  }
 0x20a   :  { %1562 = vmatprep.subr.bf16.mxu0 %v4514_v42  ;;  %1603 = vmatprep.subr.bf16.mxu1 %v4517_v43  ;;  %v4537_v42 = vld [vmem:[%s5505_s10 + $0x8] sm:$0xff]   ;;  %v4538_v43 = vld [vmem:[%s5505_s10 + $0x40] sm:$0xff]  }
 0x20d   :  { %1563 = vmatpush2.bf16.msra.mxu0 %v4512_v44  ;;  %1604 = vmatpush2.bf16.msra.mxu1 %v4515_v45  ;;  %v4539_v44 = vld [vmem:[%s5505_s10] sm:$0xff]  }
 0x20e   :  { %1564 = vmatprep.subr.bf16.mxu0 %v4520_v46  ;;  %1605 = vmatprep.subr.bf16.mxu1 %v4523_v47 }
 0x211   :  { %1565 = vmatpush2.bf16.msra.mxu0 %v4518_v49  ;;  %1606 = vmatpush2.bf16.msra.mxu1 %v4521_v51 }
 0x212   :  { %4212 = vmatprep.subr.bf16.mxu0 %v4524_v26  ;;  %v1845_v26 = vld [vmem:[%s5535_s4] sm:$0xff] }
 0x214   :  { %1567 = vmatmul.mubr.bf16.vlgmr.msra.gmra.mxu0 %v668_v57  ;;  %1608 = vmatmul.mubr.bf16.vlgmr.msra.gmra.mxu1 %v670_v58  ;;  %v1635_v57 = vld [vmem:[%s5503_s8] sm:$0x3]  ;;  %s4660_s8 = scalar_lea.vmem %s3820_s16, 128 }
 0x215   :  { %1925 = vmatprep.mubr.bf16.mxu1 %v4714_v0  ;;  %4213 = vmatpush3.bf16.msra.mxu0 %v4525_v27  ;;  %v1649_v58 = vld [vmem:[%s5504_s9] sm:$0x3]  ;;  %p4661_p10 = scmp.ne.s32.totalorder %s3820_s16, %s4660_s8  ;;  %p4666_p12 = scmp.lt.s32.totalorder %s4660_s8, %s4660_s8 }
 0x216   :  { %4214 = vmatprep.subr.bf16.mxu0 %v4526_v29 }
 0x217   :  { %p4667_p13 = por %p4666_p12, %p4665_p11 }
 0x219   :  { %4215 = vmatpush3.bf16.msra.mxu0 %v4527_v30  ;;  %p4668_p0 = pnand %p4667_p13, %p4661_p10 }
 0x21a   :  { %4216 = vmatprep.subr.bf16.mxu0 %v4528_v31 }
 0x21d   :  { %4217 = vmatpush3.bf16.msra.mxu0 %v4529_v32  ;;  %v2040_v32 = vld [vmem:[#allocation5 + $0x1c0] sm:$0xff] }
 0x21e   :  { %4218 = vmatprep.subr.bf16.mxu0 %v4530_v33  ;;  %v2044_v33 = vld [vmem:[#allocation5 + $0x1e0] sm:$0xff] }
 0x221   :  { %4219 = vmatpush3.bf16.msra.mxu0 %v4531_v34  ;;  %v2041_v34 = vld [vmem:[#allocation5 + $0x1c8] sm:$0xff] }
 0x222   :  { %4220 = vmatprep.subr.bf16.mxu0 %v4532_v35  ;;  %v4075_v35 = vcombine.low %v2040_v32, %v2044_v33 }
 0x225   :  { %4221 = vmatpush3.bf16.msra.mxu0 %v4533_v36  ;;  %v4076_v36 = vcombine.high %v2040_v32, %v2044_v33  ;;  %v1985_v32 = vld [vmem:[#allocation5 + $0x8] sm:$0xff] }
 0x226   :  { %4222 = vmatprep.subr.bf16.mxu0 %v4534_v37  ;;  %v2045_v37 = vld [vmem:[#allocation5 + $0x1e8] sm:$0xff] }
 0x227   :  { %v1989_v33 = vld [vmem:[#allocation5 + $0x28] sm:$0xff] }
 0x229   :  { %4223 = vmatpush3.bf16.msra.mxu0 %v4535_v38  ;;  %v2032_v38 = vld [vmem:[#allocation5 + $0x180] sm:$0xff] }
 0x22a   :  { %4224 = vmatprep.subr.bf16.mxu0 %v4536_v39  ;;  %v2036_v39 = vld [vmem:[#allocation5 + $0x1a0] sm:$0xff] }
 0x22d   :  { %4225 = vmatpush3.bf16.msra.mxu0 %v4537_v42  ;;  %v4077_v42 = vcombine.low %v2041_v34, %v2045_v37 }
 0x22e   :  { %4226 = vmatprep.subr.bf16.mxu0 %v4538_v43  ;;  %v4078_v43 = vcombine.high %v2041_v34, %v2045_v37  ;;  %v4022_v37 = vcombine.high %v1985_v32, %v1989_v33 }
 0x231   :  { %4227 = vmatpush3.bf16.msra.mxu0 %v4539_v44  ;;  %v4068_v44 = vcombine.high %v2032_v38, %v2036_v39 }
 0x232   :  { %2835 = vmatprep.subr.bf16.mxu0 %v4078_v43 }
 0x294   :  { %v1486_v59 = vpop.f32.mrf.mxu0  ;;  %v1527_v61 = vpop.f32.mrf.mxu1 }
 0x295   :  { %v1487_v8 = vadd.f32 %v1486_v59, %v805_v25 }
 0x296   :  { %v1488_v62 = vpop.f32.mrf.mxu0  ;;  %v1529_v63 = vpop.f32.mrf.mxu1 }
 0x297   :  { %v1489_v53 = vadd.f32 %v1488_v62, %v809_v7  ;;  %v1528_v9 = vadd.f32 %v1527_v61, %v1487_v8  ;;  %v1640_v62 = vrot.slane %v1635_v57, %v4951_v40 }
 0x298   :  { %v1490_v1 = vpop.f32.mrf.mxu0  ;;  %v1531_v4 = vpop.f32.mrf.mxu1 }
 0x299   :  { %v1530_v11 = vadd.f32 %v1529_v63, %v1489_v53  ;;  %v1644_v63 = vrot.slane %v1635_v57, %v4953_v41  ;;  %v4067_v57 = vcombine.low %v2032_v38, %v2036_v39  ;;  %v4021_v39 = vcombine.low %v1985_v32, %v1989_v33 }
 0x29a   :  { %v1491_v5 = vpop.f32.mrf.mxu0  ;;  %v1532_v6 = vpop.f32.mrf.mxu1 }
 0x29b   :  { %v1654_v5 = vrot.slane %v1649_v58, %v4951_v40  ;;  %v1658_v6 = vrot.slane %v1649_v58, %v4953_v41 }
 0x2d4   :  { %v1568_v0 = vpop.f32.mrf.mxu0  ;;  %v1609_v2 = vpop.f32.mrf.mxu1 }
 0x2d5   :  { %v1569_v52 = vadd.f32 %v1568_v0, %v1528_v9 }
 0x2d6   :  { %v1570_v12 = vpop.f32.mrf.mxu0  ;;  %v1611_v60 = vpop.f32.mrf.mxu1 }
 0x2d7   :  { %v1571_v14 = vadd.f32 %v1570_v12, %v1530_v11  ;;  %v1610_v18 = vadd.f32 %v1609_v2, %v1569_v52  ;;  %v4540_v52 = vld [vmem:[%s5507_s12 + $0x10] ss:$8 sps:$4 sm:$0xff]   ;;  %v4542_v12 = vld [vmem:[%s5507_s12 + $0x14] ss:$8 sps:$4 sm:$0xff]  }
 0x2d8   :  { %v1572_v15 = vpop.f32.mrf.mxu0  ;;  %v1613_v16 = vpop.f32.mrf.mxu1  ;;  %1905 = vmatprep.subr.bf16.mxu1 %v4542_v12  ;;  %v2000_v12 = vld [vmem:[#allocation5 + $0x80] sm:$0xff] }
 0x2d9   :  { %v1612_v28 = vadd.f32 %v1611_v60, %v1571_v14  ;;  %v1621_v21 = vmul.f32 %v1610_v18, %v1610_v18  ;;  %1906 = vmatpush1.bf16.msra.mxu1 %v4540_v52  ;;  %v3997_v14 = vld [vmem:[%s5506_s11] ss:$0 sm:$0xff]  ;;  %s4715_s11 = smov 96  }
 0x2da   :  { %v1573_v19 = vpop.f32.mrf.mxu0  ;;  %v1614_v10 = vpop.f32.mrf.mxu1 }
 0x2db   :  { %v1616_v20 = vadd.f32 %v1612_v28, %v1610_v18  ;;  %v1622_v24 = vmul.f32 %v1612_v28, %v1612_v28 }
 0x2dd   :  { %1617 = vadd.xlane.f32.xlu1 %v1616_v20  ;;  %v1623_v22 = vadd.f32 %v1622_v24, %v1621_v21  ;;  %v4545_v24 = vld [vmem:[%s5507_s12 + $0x4] ss:$8 sps:$4 sm:$0xff]   ;;  %v4543_v21 = vld [vmem:[%s5507_s12] ss:$8 sps:$4 sm:$0xff]  }
 0x2de   :  { %1907 = vmatprep.subr.bf16.mxu1 %v4545_v24  ;;  %v1993_v24 = vld [vmem:[#allocation5 + $0x48] sm:$0xff] }
 0x2df   :  { %1908 = vmatpush1.bf16.msra.mxu1 %v4543_v21  ;;  %v1997_v21 = vld [vmem:[#allocation5 + $0x68] sm:$0xff] }
 0x2e0   :  { %2794 = vmatprep.subr.bf16.mxu1 %v4076_v36 }
 0x2e1   :  { %1624 = vadd.xlane.f32.xlu1 %v1623_v22 }
 0x366   :  { %v1618_v45 = vpop.xlane.xlu1 %1617 }
 0x367   :  { %v1620_v46 = vmul.f32 0.00390625, %v1618_v45  ;;  %v2033_v45 = vld [vmem:[#allocation5 + $0x188] sm:$0xff] }
 0x369   :  { %v1627_v49 = vmul.f32 %v1620_v46, %v1620_v46  ;;  %v1629_v59 = vsub.f32 %v1610_v18, %v1620_v46  ;;  %v1630_v61 = vsub.f32 %v1612_v28, %v1620_v46  ;;  %v2037_v46 = vld [vmem:[#allocation5 + $0x1a8] sm:$0xff] }
 0x36a   :  { %v1625_v47 = vpop.xlane.xlu1 %1624  ;;  %v4069_v58 = vcombine.low %v2033_v45, %v2037_v46 }
 0x36b   :  { %v1626_v51 = vmul.f32 0.00390625, %v1625_v47  ;;  %v2024_v47 = vld [vmem:[#allocation5 + $0x140] sm:$0xff] }
 0x36d   :  { %v1628_v54 = vsub.f32 %v1626_v51, %v1627_v49  ;;  %v4070_v49 = vcombine.high %v2033_v45, %v2037_v46  ;;  %v2028_v51 = vld [vmem:[#allocation5 + $0x160] sm:$0xff] }
 0x36f   :  { %v1631_v56 = vadd.f32 1e-05, %v1628_v54  ;;  %v2025_v54 = vld [vmem:[#allocation5 + $0x148] sm:$0xff] }
 0x371   :  { %4612 = vrsqrt.f32 %v1631_v56  ;;  %v2029_v56 = vld [vmem:[#allocation5 + $0x168] sm:$0xff] }
 0x37e   :  { %v4613_v1 = vpop.eup %4612 }
 0x37f   :  { %v1634_v4 = vmul.f32 %v4613_v1, %v1630_v61  ;;  %v1633_v23 = vmul.f32 %v4613_v1, %v1629_v59  ;;  %v4060_v59 = vcombine.high %v2024_v47, %v2028_v51  ;;  %v4062_v61 = vcombine.high %v2025_v54, %v2029_v56  ;;  %v2017_v1 = vld [vmem:[#allocation5 + $0x108] sm:$0xff] }
 0x381   :  { %v1648_v25 = vmul.f32 %v1644_v63, %v1634_v4  ;;  %v1647_v7 = vmul.f32 %v1640_v62, %v1633_v23  ;;  %v2016_v62 = vld [vmem:[#allocation5 + $0x100] sm:$0xff]  ;;  %v2021_v4 = vld [vmem:[#allocation5 + $0x128] sm:$0xff] }
 0x382   :  { %v2020_v63 = vld [vmem:[#allocation5 + $0x120] sm:$0xff] }
 0x383   :  { %v1662_v8 = vadd.f32 %v1658_v6, %v1648_v25  ;;  %v1661_v53 = vadd.f32 %v1654_v5, %v1647_v7  ;;  %v4059_v5 = vcombine.low %v2024_v47, %v2028_v51  ;;  %v4061_v6 = vcombine.low %v2025_v54, %v2029_v56  ;;  %v2008_v7 = vld [vmem:[#allocation5 + $0xc0] sm:$0xff] }
 0x384   :  { %v4052_v23 = vcombine.high %v2016_v62, %v2020_v63  ;;  %v4054_v25 = vcombine.high %v2017_v1, %v2021_v4 }
 0x385   :  { %v1664_v9 = vmax.f32 %v1662_v8, 0.0  ;;  %v1663_v0 = vmax.f32 %v1661_v53, 0.0  ;;  %v2012_v8 = vld [vmem:[#allocation5 + $0xe0] sm:$0xff]  ;;  %v2009_v53 = vld [vmem:[#allocation5 + $0xc8] sm:$0xff] }
 0x387   :  { %v1666_v2 = vpack.c.bf16 %v1664_v9, %v1664_v9  ;;  %v1665_v11 = vpack.c.bf16 %v1663_v0, %v1663_v0  ;;  %v2013_v9 = vld [vmem:[#allocation5 + $0xe8] sm:$0xff]  ;;  %v4051_v0 = vcombine.low %v2016_v62, %v2020_v63  ;;  %v2108_v62 = vld [vmem:[#allocation5 + $0x3e0] sm:$0xff] }
 0x388   :  { %v4046_v52 = vcombine.high %v2009_v53, %v2013_v9  ;;  %v2105_v63 = vld [vmem:[#allocation5 + $0x3c8] sm:$0xff] }
 0x389   :  { %1834 = vmatprep.mubr.bf16.mxu0 %v1666_v2  ;;  %v4053_v2 = vcombine.low %v2017_v1, %v2021_v4  ;;  %v2109_v4 = vld [vmem:[#allocation5 + $0x3e8] sm:$0xff] }
 0x38a   :  { %1835 = vmatmul.mubr.bf16.vlgmr.msra.gmra.mxu0 %v1665_v11  ;;  %v4044_v11 = vcombine.high %v2008_v7, %v2012_v8 }
 0x38b   :  { %2836 = vmatpush1.bf16.msra.mxu0 %v4077_v42  ;;  %v1857_v42 = vld [vmem:[%s5508_s13] sm:$0x3] }
 0x38c   :  { %2837 = vmatprep.subr.bf16.mxu0 %v4070_v49  ;;  %v1862_v43 = vrot.slane %v1857_v42, %v4951_v40 }
 0x38f   :  { %2838 = vmatpush1.bf16.msra.mxu0 %v4069_v58 }
 0x390   :  { %2839 = vmatprep.subr.bf16.mxu0 %v4062_v61  ;;  %v2104_v61 = vld [vmem:[#allocation5 + $0x3c0] sm:$0xff] }
 0x391   :  { %v4140_v1 = vcombine.high %v2104_v61, %v2108_v62 }
 0x393   :  { %2840 = vmatpush1.bf16.msra.mxu0 %v4061_v6  ;;  %v4141_v6 = vcombine.low %v2105_v63, %v2109_v4 }
 0x394   :  { %2841 = vmatprep.subr.bf16.mxu0 %v4054_v25  ;;  %v2096_v25 = vld [vmem:[#allocation5 + $0x380] sm:$0xff] }
 0x397   :  { %2842 = vmatpush1.bf16.msra.mxu0 %v4053_v2 }
 0x398   :  { %2843 = vmatprep.subr.bf16.mxu0 %v4046_v52  ;;  %v2088_v52 = vld [vmem:[#allocation5 + $0x340] sm:$0xff] }
 0x44a   :  { %v4228_v60 = vpop.f32.mrf.mxu0 }
 0x44c   :  { %v4229_v15 = vpop.f32.mrf.mxu0 }
 0x44d   :  { %v4230_v16 = vadd.f32 %v4229_v15, %v4228_v60  ;;  %v2004_v60 = vld [vmem:[#allocation5 + $0xa0] sm:$0xff]  ;;  %v2005_v15 = vld [vmem:[#allocation5 + $0xa8] sm:$0xff] }
 0x44e   :  { %v4231_v18 = vpop.f32.mrf.mxu0 }
 0x44f   :  { %v1837_v28 = vadd.f32 %v4230_v16, %v3997_v14  ;;  %v2001_v14 = vld [vmem:[#allocation5 + $0x88] sm:$0xff]  ;;  %v4043_v16 = vcombine.low %v2008_v7, %v2012_v8  ;;  %v4045_v18 = vcombine.low %v2009_v53, %v2013_v9  ;;  %v2100_v7 = vld [vmem:[#allocation5 + $0x3a0] sm:$0xff] }
 0x450   :  { %v4232_v19 = vpop.f32.mrf.mxu0  ;;  %v2097_v8 = vld [vmem:[#allocation5 + $0x388] sm:$0xff]  ;;  %v4132_v53 = vcombine.high %v2096_v25, %v2100_v7 }
 0x451   :  { %v1842_v10 = vmul.f32 0.5, %v1837_v28  ;;  %3802 = vst.msk [vmem:[#allocation8] sm:$0xff] %vm339_vm0, %v1837_v28  ;;  %v4038_v19 = vcombine.high %v2001_v14, %v2005_v15  ;;  %2844 = vmatpush1.bf16.msra.mxu0 %v4045_v18  ;;  %v2101_v9 = vld [vmem:[#allocation5 + $0x3a8] sm:$0xff] }
 0x452   :  { %v4133_v2 = vcombine.low %v2097_v8, %v2101_v9 }
 0x453   :  { %v1843_v20 = vmul.f32 1.442695, %v1842_v10  ;;  %v1992_v10 = vld [vmem:[#allocation5 + $0x40] sm:$0xff]  ;;  %2845 = vmatprep.subr.bf16.mxu0 %v4038_v19 }
 0x454   :  { %v2080_v19 = vld [vmem:[#allocation5 + $0x300] sm:$0xff] }
 0x455   :  { %4614 = vpow2.f32 %v1843_v20  ;;  %v1996_v20 = vld [vmem:[#allocation5 + $0x60] sm:$0xff] }
 0x456   :  { %v4027_v34 = vcombine.low %v1992_v10, %v1996_v20 }
 0x462   :  { %v4615_v22 = vpop.eup %4614 }
 0x463   :  { %1847 = vrot.lane.b32.xlu0 %v4615_v22, %s4715_s11  ;;  %v4035_v22 = vcombine.low %v2000_v12, %v2004_v60 }
 0x4d5   :  { %v1848_v27 = vpop.permute.xlu0 %1847 }
 0x4d6   :  { %v1850_v29 = vmul.f32 %v1848_v27, %v1845_v26  ;;  %v4037_v26 = vcombine.low %v2001_v14, %v2005_v15  ;;  %v4028_v27 = vcombine.high %v1992_v10, %v1996_v20  ;;  %v2093_v15 = vld [vmem:[#allocation5 + $0x368] sm:$0xff]  ;;  %v2084_v10 = vld [vmem:[#allocation5 + $0x320] sm:$0xff] }
 0x4d7   :  { %v2081_v20 = vld [vmem:[#allocation5 + $0x308] sm:$0xff] }
 0x4d8   :  { %v1851_v30 = vadd.f32 %v1850_v29, %v1837_v28  ;;  %v4036_v28 = vcombine.high %v2000_v12, %v2004_v60  ;;  %v4030_v29 = vcombine.high %v1993_v24, %v1997_v21  ;;  %2846 = vmatpush1.bf16.msra.mxu0 %v4037_v26  ;;  %v2092_v12 = vld [vmem:[#allocation5 + $0x360] sm:$0xff]  ;;  %v2089_v60 = vld [vmem:[#allocation5 + $0x348] sm:$0xff] }
 0x4d9   :  { %v4124_v14 = vcombine.high %v2088_v52, %v2092_v12  ;;  %v4125_v18 = vcombine.low %v2089_v60, %v2093_v15  ;;  %v2076_v26 = vld [vmem:[#allocation5 + $0x2e0] sm:$0xff] }
 0x4da   :  { %v1852_v31 = vpack.c.bf16 %v1851_v30, %v1851_v30  ;;  %v1984_v30 = vld [vmem:[#allocation5] sm:$0xff]  ;;  %2847 = vmatprep.subr.bf16.mxu0 %v4030_v29 }
 0x4dc   :  { %4018 = vmatmul.mubr.msk.bf16.vlgmr.msra.gmra.mxu1 %vm1889_vm1, %v1852_v31  ;;  %v1988_v31 = vld [vmem:[#allocation5 + $0x20] sm:$0xff] }
 0x4dd   :  { %2795 = vmatpush1.bf16.msra.mxu1 %v4075_v35  ;;  %v4029_v35 = vcombine.low %v1993_v24, %v1997_v21  ;;  %v4020_v36 = vcombine.high %v1984_v30, %v1988_v31  ;;  %v4019_v38 = vcombine.low %v1984_v30, %v1988_v31  ;;  %v4116_v24 = vcombine.high %v2080_v19, %v2084_v10  ;;  %v2085_v21 = vld [vmem:[#allocation5 + $0x328] sm:$0xff] }
 0x4de   :  { %2796 = vmatprep.subr.bf16.mxu1 %v4068_v44  ;;  %v1866_v44 = vrot.slane %v1857_v42, %v4953_v41  ;;  %v4118_v29 = vcombine.high %v2081_v20, %v2085_v21  ;;  %v2073_v30 = vld [vmem:[#allocation5 + $0x2c8] sm:$0xff]  ;;  %v4117_v32 = vcombine.low %v2081_v20, %v2085_v21  ;;  %v1966_v20 = vld [vmem:[%s5510_s15] sm:$0x3] }
 0x4df   :  { %2848 = vmatpush1.bf16.msra.mxu0 %v4029_v35  ;;  %v2077_v31 = vld [vmem:[#allocation5 + $0x2e8] sm:$0xff]  ;;  %v2064_v35 = vld [vmem:[#allocation5 + $0x280] sm:$0xff] }
 0x4e0   :  { %2849 = vmatprep.subr.bf16.mxu0 %v4022_v37  ;;  %v2065_v37 = vld [vmem:[#allocation5 + $0x288] sm:$0xff]  ;;  %v4109_v42 = vcombine.low %v2073_v30, %v2077_v31 }
 0x4e1   :  { %2797 = vmatpush1.bf16.msra.mxu1 %v4067_v57 }
 0x4e2   :  { %2798 = vmatprep.subr.bf16.mxu1 %v4060_v59 }
 0x4e3   :  { %2850 = vmatpush1.bf16.msra.mxu0 %v4021_v39 }
 0x4e5   :  { %2799 = vmatpush1.bf16.msra.mxu1 %v4059_v5  ;;  %v4139_v5 = vcombine.low %v2104_v61, %v2108_v62  ;;  %v2048_v61 = vld [vmem:[#allocation5 + $0x200] sm:$0xff] }
 0x4e6   :  { %2800 = vmatprep.subr.bf16.mxu1 %v4052_v23  ;;  %v4142_v23 = vcombine.high %v2105_v63, %v2109_v4  ;;  %v2052_v62 = vld [vmem:[#allocation5 + $0x220] sm:$0xff]  ;;  %v2049_v63 = vld [vmem:[#allocation5 + $0x208] sm:$0xff] }
 0x4e8   :  { %2851 = vmatprep.subr.bf16.mxu0 %v4142_v23 }
 0x4e9   :  { %2801 = vmatpush1.bf16.msra.mxu1 %v4051_v0  ;;  %2852 = vmatpush2.bf16.msra.mxu0 %v4141_v6  ;;  %v4131_v0 = vcombine.low %v2096_v25, %v2100_v7  ;;  %v4084_v6 = vcombine.high %v2048_v61, %v2052_v62  ;;  %v4083_v25 = vcombine.low %v2048_v61, %v2052_v62 }
 0x4ea   :  { %2802 = vmatprep.subr.bf16.mxu1 %v4044_v11  ;;  %v4134_v11 = vcombine.high %v2097_v8, %v2101_v9  ;;  %v2042_v8 = vld [vmem:[#allocation5 + $0x1d0] sm:$0xff]  ;;  %v2043_v9 = vld [vmem:[#allocation5 + $0x1d8] sm:$0xff] }
 0x4ec   :  { %2853 = vmatprep.subr.bf16.mxu0 %v4134_v11 }
 0x4ed   :  { %2803 = vmatpush1.bf16.msra.mxu1 %v4043_v16  ;;  %2854 = vmatpush2.bf16.msra.mxu0 %v4133_v2  ;;  %v4123_v16 = vcombine.low %v2088_v52, %v2092_v12  ;;  %v2047_v2 = vld [vmem:[#allocation5 + $0x1f8] sm:$0xff] }
 0x4ee   :  { %2804 = vmatprep.subr.bf16.mxu1 %v4036_v28  ;;  %v4126_v28 = vcombine.high %v2089_v60, %v2093_v15  ;;  %v4081_v52 = vcombine.low %v2043_v9, %v2047_v2  ;;  %v4082_v12 = vcombine.high %v2043_v9, %v2047_v2  ;;  %v2011_v9 = vld [vmem:[#allocation5 + $0xd8] sm:$0xff] }
 0x4f0   :  { %2855 = vmatprep.subr.bf16.mxu0 %v4126_v28 }
 0x4f1   :  { %2805 = vmatpush1.bf16.msra.mxu1 %v4035_v22  ;;  %v2072_v22 = vld [vmem:[#allocation5 + $0x2c0] sm:$0xff]  ;;  %2856 = vmatpush2.bf16.msra.mxu0 %v4125_v18 }
 0x4f2   :  { %2806 = vmatprep.subr.bf16.mxu1 %v4028_v27  ;;  %v4115_v27 = vcombine.low %v2080_v19, %v2084_v10  ;;  %v4108_v33 = vcombine.high %v2072_v22, %v2076_v26  ;;  %2857 = vmatprep.subr.bf16.mxu0 %v4118_v29  ;;  %v4107_v39 = vcombine.low %v2072_v22, %v2076_v26  ;;  %v1952_v10 = vld [vmem:[%s5509_s14] sm:$0x3] }
 0x4f3   :  { %v1961_v22 = vrot.slane %v1952_v10, %v4953_v41  ;;  %v1957_v26 = vrot.slane %v1952_v10, %v4951_v40 }
 0x4f5   :  { %2807 = vmatpush1.bf16.msra.mxu1 %v4027_v34  ;;  %v4110_v34 = vcombine.high %v2073_v30, %v2077_v31  ;;  %2858 = vmatpush2.bf16.msra.mxu0 %v4117_v32  ;;  %v1975_v30 = vrot.slane %v1966_v20, %v4953_v41  ;;  %v1971_v32 = vrot.slane %v1966_v20, %v4951_v40  ;;  %v1994_v20 = vld [vmem:[#allocation5 + $0x50] sm:$0xff] }
 0x4f6   :  { %2808 = vmatprep.subr.bf16.mxu1 %v4020_v36  ;;  %v2068_v36 = vld [vmem:[#allocation5 + $0x2a0] sm:$0xff] }
 0x4f7   :  { %2859 = vmatprep.subr.bf16.mxu0 %v4110_v34 }
 0x4f9   :  { %2809 = vmatpush1.bf16.msra.mxu1 %v4019_v38  ;;  %v2069_v38 = vld [vmem:[#allocation5 + $0x2a8] sm:$0xff]  ;;  %2860 = vmatpush2.bf16.msra.mxu0 %v4109_v42  ;;  %v2039_v42 = vld [vmem:[#allocation5 + $0x1b8] sm:$0xff] }
 0x4fa   :  { %2810 = vmatprep.subr.bf16.mxu1 %v4140_v1  ;;  %v2053_v1 = vld [vmem:[#allocation5 + $0x228] sm:$0xff] }
 0x4fb   :  { %v4086_v23 = vcombine.high %v2049_v63, %v2053_v1  ;;  %v4085_v7 = vcombine.low %v2049_v63, %v2053_v1  ;;  %v2018_v63 = vld [vmem:[#allocation5 + $0x110] sm:$0xff] }
 0x4fc   :  { %v2022_v1 = vld [vmem:[#allocation5 + $0x130] sm:$0xff] }
 0x4fd   :  { %2811 = vmatpush2.bf16.msra.mxu1 %v4139_v5  ;;  %v4055_v2 = vcombine.low %v2018_v63, %v2022_v1 }
 0x4fe   :  { %2812 = vmatprep.subr.bf16.mxu1 %v4132_v53  ;;  %v2046_v53 = vld [vmem:[#allocation5 + $0x1f0] sm:$0xff] }
 0x4ff   :  { %v4079_v11 = vcombine.low %v2042_v8, %v2046_v53 }
 0x501   :  { %2813 = vmatpush2.bf16.msra.mxu1 %v4131_v0  ;;  %v4080_v0 = vcombine.high %v2042_v8, %v2046_v53  ;;  %v2010_v8 = vld [vmem:[#allocation5 + $0xd0] sm:$0xff] }
 0x502   :  { %2814 = vmatprep.subr.bf16.mxu1 %v4124_v14  ;;  %v2014_v53 = vld [vmem:[#allocation5 + $0xf0] sm:$0xff] }
 0x505   :  { %2815 = vmatpush2.bf16.msra.mxu1 %v4123_v16 }
 0x506   :  { %2816 = vmatprep.subr.bf16.mxu1 %v4116_v24 }
 0x509   :  { %2817 = vmatpush2.bf16.msra.mxu1 %v4115_v27 }
 0x50a   :  { %2818 = vmatprep.subr.bf16.mxu1 %v4108_v33 }
 0x50d   :  { %2819 = vmatpush2.bf16.msra.mxu1 %v4107_v39  ;;  %v2038_v39 = vld [vmem:[#allocation5 + $0x1b0] sm:$0xff] }
 0x59c   :  { %v1927_v45 = vpop.f32.mrf.mxu1 }
 0x59d   :  { %v5142_v47 = vadd.f32 %v1927_v45, %v1862_v43  ;;  %v4100_v43 = vcombine.high %v2064_v35, %v2068_v36  ;;  %v2056_v45 = vld [vmem:[#allocation5 + $0x240] sm:$0xff] }
 0x59e   :  { %v1929_v46 = vpop.f32.mrf.mxu1 }
 0x59f   :  { %v5144_v49 = vadd.f32 %v1929_v46, %v1866_v44  ;;  %v1938_v58 = vmul.f32 %v5142_v47, %v5142_v47  ;;  %v4102_v44 = vcombine.high %v2065_v37, %v2069_v38  ;;  %v2060_v46 = vld [vmem:[#allocation5 + $0x260] sm:$0xff]  ;;  %2820 = vmatprep.subr.bf16.mxu1 %v4100_v43 }
 0x5a0   :  { %v1931_v51 = vpop.f32.mrf.mxu1  ;;  %v4091_v4 = vcombine.low %v2056_v45, %v2060_v46 }
 0x5a1   :  { %v1934_v54 = vadd.f32 %v5144_v49, %v5142_v47  ;;  %v1939_v56 = vmul.f32 %v5144_v49, %v5144_v49  ;;  %v2057_v51 = vld [vmem:[#allocation5 + $0x248] sm:$0xff]  ;;  %2861 = vmatprep.subr.bf16.mxu0 %v4102_v44 }
 0x5a2   :  { %v1932_v57 = vpop.f32.mrf.mxu1 }
 0x5a3   :  { %1935 = vadd.xlane.f32.xlu1 %v1934_v54  ;;  %v1940_v59 = vadd.f32 %v1939_v56, %v1938_v58  ;;  %v2061_v54 = vld [vmem:[#allocation5 + $0x268] sm:$0xff]  ;;  %v4099_v56 = vcombine.low %v2064_v35, %v2068_v36  ;;  %v4101_v57 = vcombine.low %v2065_v37, %v2069_v38  ;;  %v4092_v58 = vcombine.high %v2056_v45, %v2060_v46  ;;  %v2026_v45 = vld [vmem:[#allocation5 + $0x150] sm:$0xff] }
 0x5a4   :  { %v4093_v5 = vcombine.low %v2057_v51, %v2061_v54 }
 0x5a5   :  { %2821 = vmatpush2.bf16.msra.mxu1 %v4099_v56  ;;  %2862 = vmatpush2.bf16.msra.mxu0 %v4101_v57  ;;  %v2027_v56 = vld [vmem:[#allocation5 + $0x158] sm:$0xff] }
 0x5a6   :  { %2822 = vmatprep.subr.bf16.mxu1 %v4092_v58  ;;  %v2031_v57 = vld [vmem:[#allocation5 + $0x178] sm:$0xff] }
 0x5a7   :  { %1941 = vadd.xlane.f32.xlu1 %v1940_v59  ;;  %v4094_v59 = vcombine.high %v2057_v51, %v2061_v54  ;;  %v2030_v54 = vld [vmem:[#allocation5 + $0x170] sm:$0xff]  ;;  %v4066_v62 = vcombine.high %v2027_v56, %v2031_v57 }
 0x5a8   :  { %v4064_v61 = vcombine.high %v2026_v45, %v2030_v54 }
 0x5a9   :  { %2863 = vmatprep.subr.bf16.mxu0 %v4094_v59  ;;  %2823 = vmatpush2.bf16.msra.mxu1 %v4091_v4  ;;  %v2019_v4 = vld [vmem:[#allocation5 + $0x118] sm:$0xff] }
 0x5aa   :  { %2864 = vmatpush2.bf16.msra.mxu0 %v4093_v5  ;;  %2824 = vmatprep.subr.bf16.mxu1 %v4084_v6  ;;  %v2023_v5 = vld [vmem:[#allocation5 + $0x138] sm:$0xff]  ;;  %v4063_v6 = vcombine.low %v2026_v45, %v2030_v54  ;;  %v2098_v54 = vld [vmem:[#allocation5 + $0x390] sm:$0xff] }
 0x5ab   :  { %2865 = vmatprep.subr.bf16.mxu0 %v4086_v23  ;;  %v4065_v23 = vcombine.low %v2027_v56, %v2031_v57  ;;  %v2102_v56 = vld [vmem:[#allocation5 + $0x3b0] sm:$0xff]  ;;  %v2099_v57 = vld [vmem:[#allocation5 + $0x398] sm:$0xff] }
 0x5ad   :  { %2825 = vmatpush2.bf16.msra.mxu1 %v4083_v25  ;;  %v4056_v25 = vcombine.high %v2018_v63, %v2022_v1  ;;  %v2090_v1 = vld [vmem:[#allocation5 + $0x350] sm:$0xff] }
 0x5ae   :  { %2866 = vmatpush2.bf16.msra.mxu0 %v4085_v7  ;;  %2876 = vmatprep.subr.bf16.mxu1 %v4080_v0  ;;  %v4058_v7 = vcombine.high %v2019_v4, %v2023_v5  ;;  %v2015_v0 = vld [vmem:[#allocation5 + $0xf8] sm:$0xff] }
 0x5af   :  { %2917 = vmatprep.subr.bf16.mxu0 %v4082_v12  ;;  %v4050_v12 = vcombine.high %v2011_v9, %v2015_v0 }
 0x62c   :  { %v1936_v60 = vpop.xlane.xlu1 %1935 }
 0x62d   :  { %v1937_v14 = vmul.f32 0.00390625, %v1936_v60  ;;  %v2002_v60 = vld [vmem:[#allocation5 + $0x90] sm:$0xff] }
 0x62f   :  { %v1944_v16 = vmul.f32 %v1937_v14, %v1937_v14  ;;  %v1946_v24 = vsub.f32 %v5142_v47, %v1937_v14  ;;  %v1947_v21 = vsub.f32 %v5144_v49, %v1937_v14  ;;  %v2034_v47 = vld [vmem:[#allocation5 + $0x190] sm:$0xff]  ;;  %v2035_v49 = vld [vmem:[#allocation5 + $0x198] sm:$0xff] }
 0x630   :  { %v1942_v15 = vpop.xlane.xlu1 %1941  ;;  %v4072_v46 = vcombine.high %v2034_v47, %v2038_v39  ;;  %v4074_v51 = vcombine.high %v2035_v49, %v2039_v42  ;;  %v4071_v58 = vcombine.low %v2034_v47, %v2038_v39  ;;  %v4073_v59 = vcombine.low %v2035_v49, %v2039_v42  ;;  %v2006_v14 = vld [vmem:[#allocation5 + $0xb0] sm:$0xff]  ;;  %v2107_v49 = vld [vmem:[#allocation5 + $0x3d8] sm:$0xff] }
 0x631   :  { %v1943_v18 = vmul.f32 0.00390625, %v1942_v15  ;;  %v2003_v15 = vld [vmem:[#allocation5 + $0x98] sm:$0xff]  ;;  %v2106_v47 = vld [vmem:[#allocation5 + $0x3d0] sm:$0xff] }
 0x632   :  { %v2110_v39 = vld [vmem:[#allocation5 + $0x3f0] sm:$0xff]  ;;  %v2111_v42 = vld [vmem:[#allocation5 + $0x3f8] sm:$0xff] }
 0x633   :  { %v1945_v28 = vsub.f32 %v1943_v18, %v1944_v16  ;;  %v2007_v16 = vld [vmem:[#allocation5 + $0xb8] sm:$0xff]  ;;  %v4047_v18 = vcombine.low %v2010_v8, %v2014_v53 }
 0x634   :  { %v4042_v10 = vcombine.high %v2003_v15, %v2007_v16 }
 0x635   :  { %v1948_v19 = vadd.f32 1e-05, %v1945_v28  ;;  %v4049_v28 = vcombine.low %v2011_v9, %v2015_v0  ;;  %v2086_v9 = vld [vmem:[#allocation5 + $0x330] sm:$0xff]  ;;  %v2083_v0 = vld [vmem:[#allocation5 + $0x318] sm:$0xff] }
 0x637   :  { %4616 = vrsqrt.f32 %v1948_v19  ;;  %v4040_v19 = vcombine.high %v2002_v60, %v2006_v14 }
 0x644   :  { %v4617_v27 = vpop.eup %4616 }
 0x645   :  { %v1951_v29 = vmul.f32 %v4617_v27, %v1947_v21  ;;  %v1950_v31 = vmul.f32 %v4617_v27, %v1946_v24  ;;  %v1998_v24 = vld [vmem:[#allocation5 + $0x70] sm:$0xff]  ;;  %v1995_v21 = vld [vmem:[#allocation5 + $0x58] sm:$0xff]  ;;  %v4041_v27 = vcombine.low %v2003_v15, %v2007_v16 }
 0x646   :  { %v2078_v15 = vld [vmem:[#allocation5 + $0x2f0] sm:$0xff]  ;;  %v2075_v16 = vld [vmem:[#allocation5 + $0x2d8] sm:$0xff] }
 0x647   :  { %v1965_v33 = vmul.f32 %v1961_v22, %v1951_v29  ;;  %v1964_v34 = vmul.f32 %v1957_v26, %v1950_v31  ;;  %v1999_v22 = vld [vmem:[#allocation5 + $0x78] sm:$0xff]  ;;  %v4039_v26 = vcombine.low %v2002_v60, %v2006_v14  ;;  %v4032_v29 = vcombine.high %v1994_v20, %v1998_v24  ;;  %v1986_v31 = vld [vmem:[#allocation5 + $0x10] sm:$0xff] }
 0x648   :  { %v2074_v14 = vld [vmem:[#allocation5 + $0x2d0] sm:$0xff] }
 0x649   :  { %v1979_v35 = vadd.f32 %v1975_v30, %v1965_v33  ;;  %v1978_v36 = vadd.f32 %v1971_v32, %v1964_v34  ;;  %v4034_v30 = vcombine.high %v1995_v21, %v1999_v22  ;;  %v1990_v32 = vld [vmem:[#allocation5 + $0x30] sm:$0xff]  ;;  %v1987_v33 = vld [vmem:[#allocation5 + $0x18] sm:$0xff] }
 0x64a   :  { %v1991_v34 = vld [vmem:[#allocation5 + $0x38] sm:$0xff] }
 0x64b   :  { %v1981_v37 = vmax.f32 %v1979_v35, 0.0  ;;  %v1980_v38 = vmax.f32 %v1978_v36, 0.0  ;;  %v4031_v35 = vcombine.low %v1994_v20, %v1998_v24  ;;  %v4033_v36 = vcombine.low %v1995_v21, %v1999_v22  ;;  %v2066_v24 = vld [vmem:[#allocation5 + $0x290] sm:$0xff]  ;;  %v2067_v22 = vld [vmem:[#allocation5 + $0x298] sm:$0xff] }
 0x64c   :  { %v4025_v45 = vcombine.low %v1987_v33, %v1991_v34  ;;  %v2070_v21 = vld [vmem:[#allocation5 + $0x2b0] sm:$0xff] }
 0x64d   :  { %v1983_v43 = vpack.c.bf16 %v1981_v37, %v1981_v37  ;;  %v5164_v44 = vpack.c.bf16 %v1980_v38, %v1980_v38  ;;  %v4024_v37 = vcombine.high %v1986_v31, %v1990_v32  ;;  %v4026_v38 = vcombine.high %v1987_v33, %v1991_v34  ;;  %v2062_v33 = vld [vmem:[#allocation5 + $0x270] sm:$0xff]  ;;  %v2059_v34 = vld [vmem:[#allocation5 + $0x258] sm:$0xff] }
 0x64f   :  { %2826 = vmatprep.mubr.bf16.mxu1 %v1983_v43  ;;  %2867 = vmatprep.mubr.bf16.mxu0 %v1983_v43 }
 0x650   :  { %2827 = vmatmul.mubr.bf16.vlgmr.msra.gmra.mxu1 %v5164_v44  ;;  %2868 = vmatmul.mubr.bf16.vlgmr.msra.gmra.mxu0 %v5164_v44 }
 0x651   :  { %2877 = vmatpush1.bf16.msra.mxu1 %v4079_v11  ;;  %2918 = vmatpush1.bf16.msra.mxu0 %v4081_v52  ;;  %v4057_v11 = vcombine.low %v2019_v4, %v2023_v5  ;;  %v4048_v52 = vcombine.high %v2010_v8, %v2014_v53  ;;  %v2094_v4 = vld [vmem:[#allocation5 + $0x370] sm:$0xff]  ;;  %v2091_v5 = vld [vmem:[#allocation5 + $0x358] sm:$0xff] }
 0x652   :  { %2908 = vmatprep.mubr.bf16.mxu1 %v1983_v43  ;;  %2949 = vmatprep.mubr.bf16.mxu0 %v1983_v43  ;;  %v4023_v43 = vcombine.low %v1986_v31, %v1990_v32  ;;  %v2082_v53 = vld [vmem:[#allocation5 + $0x310] sm:$0xff] }
 0x653   :  { %2878 = vmatprep.subr.bf16.mxu1 %v4072_v46  ;;  %2919 = vmatprep.subr.bf16.mxu0 %v4074_v51  ;;  %v4144_v46 = vcombine.high %v2106_v47, %v2110_v39  ;;  %v4146_v51 = vcombine.high %v2107_v49, %v2111_v42  ;;  %v2058_v32 = vld [vmem:[#allocation5 + $0x250] sm:$0xff] }
 0x655   :  { %2879 = vmatpush1.bf16.msra.mxu1 %v4071_v58  ;;  %2920 = vmatpush1.bf16.msra.mxu0 %v4073_v59  ;;  %v2103_v58 = vld [vmem:[#allocation5 + $0x3b8] sm:$0xff]  ;;  %v4143_v59 = vcombine.low %v2106_v47, %v2110_v39  ;;  %v2050_v39 = vld [vmem:[#allocation5 + $0x210] sm:$0xff] }
 0x656   :  { %2880 = vmatprep.subr.bf16.mxu1 %v4064_v61  ;;  %2921 = vmatprep.subr.bf16.mxu0 %v4066_v62  ;;  %v4145_v61 = vcombine.low %v2107_v49, %v2111_v42  ;;  %v4136_v62 = vcombine.high %v2098_v54, %v2102_v56  ;;  %v4138_v63 = vcombine.high %v2099_v57, %v2103_v58  ;;  %v2054_v49 = vld [vmem:[#allocation5 + $0x230] sm:$0xff]  ;;  %v2051_v42 = vld [vmem:[#allocation5 + $0x218] sm:$0xff] }
 0x659   :  { %2881 = vmatpush1.bf16.msra.mxu1 %v4063_v6  ;;  %2922 = vmatpush1.bf16.msra.mxu0 %v4065_v23  ;;  %v2095_v6 = vld [vmem:[#allocation5 + $0x378] sm:$0xff]  ;;  %v4135_v23 = vcombine.low %v2098_v54, %v2102_v56  ;;  %v4087_v56 = vcombine.low %v2050_v39, %v2054_v49 }
 0x65a   :  { %2882 = vmatprep.subr.bf16.mxu1 %v4056_v25  ;;  %2923 = vmatprep.subr.bf16.mxu0 %v4058_v7  ;;  %v4137_v25 = vcombine.low %v2099_v57, %v2103_v58  ;;  %v4128_v7 = vcombine.high %v2090_v1, %v2094_v4  ;;  %v4130_v8 = vcombine.high %v2091_v5, %v2095_v6 }
 0x65d   :  { %2883 = vmatpush1.bf16.msra.mxu1 %v4055_v2  ;;  %2924 = vmatpush1.bf16.msra.mxu0 %v4057_v11  ;;  %v2087_v2 = vld [vmem:[#allocation5 + $0x338] sm:$0xff]  ;;  %v4127_v11 = vcombine.low %v2090_v1, %v2094_v4 }
 0x65e   :  { %2884 = vmatprep.subr.bf16.mxu1 %v4048_v52  ;;  %2925 = vmatprep.subr.bf16.mxu0 %v4050_v12  ;;  %v4129_v52 = vcombine.low %v2091_v5, %v2095_v6  ;;  %v4120_v12 = vcombine.high %v2082_v53, %v2086_v9  ;;  %v4122_v60 = vcombine.high %v2083_v0, %v2087_v2  ;;  %v2112_v6 = vld [vmem:[%s5512_s17] sm:$0xff] }
 0x661   :  { %2885 = vmatpush1.bf16.msra.mxu1 %v4047_v18  ;;  %2926 = vmatpush1.bf16.msra.mxu0 %v4049_v28  ;;  %v2079_v18 = vld [vmem:[#allocation5 + $0x2f8] sm:$0xff]  ;;  %v4119_v28 = vcombine.low %v2082_v53, %v2086_v9 }
 0x662   :  { %2886 = vmatprep.subr.bf16.mxu1 %v4040_v19  ;;  %2927 = vmatprep.subr.bf16.mxu0 %v4042_v10  ;;  %v4121_v19 = vcombine.low %v2083_v0, %v2087_v2  ;;  %v4112_v10 = vcombine.high %v2074_v14, %v2078_v15  ;;  %v4114_v20 = vcombine.high %v2075_v16, %v2079_v18 }
 0x663   :  { %v2129_v2 = vrot.slane %v2112_v6, %v4962_v50 }
 0x665   :  { %2887 = vmatpush1.bf16.msra.mxu1 %v4039_v26  ;;  %2928 = vmatpush1.bf16.msra.mxu0 %v4041_v27  ;;  %v2071_v26 = vld [vmem:[#allocation5 + $0x2b8] sm:$0xff]  ;;  %v4111_v27 = vcombine.low %v2074_v14, %v2078_v15  ;;  %v2133_v15 = vrot.slane %v2112_v6, %v4969_v55 }
 0x666   :  { %2888 = vmatprep.subr.bf16.mxu1 %v4032_v29  ;;  %2929 = vmatprep.subr.bf16.mxu0 %v4034_v30  ;;  %v4113_v29 = vcombine.low %v2075_v16, %v2079_v18  ;;  %v4104_v30 = vcombine.high %v2066_v24, %v2070_v21  ;;  %v4106_v31 = vcombine.high %v2067_v22, %v2071_v26 }
 0x667   :  { %v2141_v18 = vrot.slane %v2112_v6, %v4994_v13 }
 0x669   :  { %2889 = vmatpush1.bf16.msra.mxu1 %v4031_v35  ;;  %2930 = vmatpush1.bf16.msra.mxu0 %v4033_v36  ;;  %v2063_v35 = vld [vmem:[#allocation5 + $0x278] sm:$0xff]  ;;  %v4103_v36 = vcombine.low %v2066_v24, %v2070_v21 }
 0x66a   :  { %2890 = vmatprep.subr.bf16.mxu1 %v4024_v37  ;;  %2931 = vmatprep.subr.bf16.mxu0 %v4026_v38  ;;  %v4105_v37 = vcombine.low %v2067_v22, %v2071_v26  ;;  %v4096_v38 = vcombine.high %v2058_v32, %v2062_v33  ;;  %v4098_v47 = vcombine.high %v2059_v34, %v2063_v35 }
 0x66d   :  { %2891 = vmatpush1.bf16.msra.mxu1 %v4023_v43  ;;  %2932 = vmatpush1.bf16.msra.mxu0 %v4025_v45  ;;  %v2055_v43 = vld [vmem:[#allocation5 + $0x238] sm:$0xff]  ;;  %v4095_v45 = vcombine.low %v2058_v32, %v2062_v33 }
 0x66e   :  { %2892 = vmatprep.subr.bf16.mxu1 %v4144_v46  ;;  %2933 = vmatprep.subr.bf16.mxu0 %v4146_v51  ;;  %v4097_v46 = vcombine.low %v2059_v34, %v2063_v35  ;;  %v4088_v51 = vcombine.high %v2050_v39, %v2054_v49  ;;  %v4090_v54 = vcombine.high %v2051_v42, %v2055_v43 }
 0x66f   :  { %v4089_v57 = vcombine.low %v2051_v42, %v2055_v43 }
 0x671   :  { %2893 = vmatpush2.bf16.msra.mxu1 %v4143_v59  ;;  %2934 = vmatpush2.bf16.msra.mxu0 %v4145_v61 }
 0x672   :  { %2894 = vmatprep.subr.bf16.mxu1 %v4136_v62  ;;  %2935 = vmatprep.subr.bf16.mxu0 %v4138_v63 }
 0x675   :  { %2895 = vmatpush2.bf16.msra.mxu1 %v4135_v23  ;;  %2936 = vmatpush2.bf16.msra.mxu0 %v4137_v25  ;;  %v2121_v23 = vrot.slane %v2112_v6, %v4953_v41  ;;  %v2117_v25 = vrot.slane %v2112_v6, %v4951_v40 }
 0x676   :  { %2896 = vmatprep.subr.bf16.mxu1 %v4128_v7  ;;  %2937 = vmatprep.subr.bf16.mxu0 %v4130_v8 }
 0x679   :  { %2897 = vmatpush2.bf16.msra.mxu1 %v4127_v11  ;;  %2938 = vmatpush2.bf16.msra.mxu0 %v4129_v52 }
 0x67a   :  { %2898 = vmatprep.subr.bf16.mxu1 %v4120_v12  ;;  %2939 = vmatprep.subr.bf16.mxu0 %v4122_v60 }
 0x67d   :  { %2899 = vmatpush2.bf16.msra.mxu1 %v4119_v28  ;;  %2940 = vmatpush2.bf16.msra.mxu0 %v4121_v19  ;;  %v2137_v28 = vrot.slane %v2112_v6, %v4985_v3 }
 0x67e   :  { %2900 = vmatprep.subr.bf16.mxu1 %v4112_v10  ;;  %2941 = vmatprep.subr.bf16.mxu0 %v4114_v20 }
 0x681   :  { %2901 = vmatpush2.bf16.msra.mxu1 %v4111_v27  ;;  %2942 = vmatpush2.bf16.msra.mxu0 %v4113_v29  ;;  %v2145_v27 = vrot.slane %v2112_v6, %v5000_v17 }
 0x682   :  { %2902 = vmatprep.subr.bf16.mxu1 %v4104_v30  ;;  %2943 = vmatprep.subr.bf16.mxu0 %v4106_v31 }
 0x685   :  { %2903 = vmatpush2.bf16.msra.mxu1 %v4103_v36  ;;  %2944 = vmatpush2.bf16.msra.mxu0 %v4105_v37 }
 0x686   :  { %2904 = vmatprep.subr.bf16.mxu1 %v4096_v38  ;;  %2945 = vmatprep.subr.bf16.mxu0 %v4098_v47 }
 0x689   :  { %2905 = vmatpush2.bf16.msra.mxu1 %v4095_v45  ;;  %2946 = vmatpush2.bf16.msra.mxu0 %v4097_v46 }
 0x68a   :  { %2906 = vmatprep.subr.bf16.mxu1 %v4088_v51  ;;  %2947 = vmatprep.subr.bf16.mxu0 %v4090_v54 }
 0x68d   :  { %2907 = vmatpush2.bf16.msra.mxu1 %v4087_v56  ;;  %2948 = vmatpush2.bf16.msra.mxu0 %v4089_v57  ;;  %v4546_v57 = vld [vmem:[%s5515_s20 + $0x78] sm:$0xff]  }
 0x68e   :  { %4234 = vmatprep.subr.bf16.mxu1 %v4546_v57 }
 0x690   :  { %2909 = vmatmul.mubr.bf16.vlgmr.msra.gmra.mxu1 %v5164_v44  ;;  %2950 = vmatmul.mubr.bf16.vlgmr.msra.gmra.mxu0 %v5164_v44  ;;  %v2125_v44 = vrot.slane %v2112_v6, %v4960_v48  ;;  %v4555_v6 = vld [vmem:[%s5515_s20 + $0xe8] sm:$0xff]  }
 0x710   :  { %v2828_v58 = vpop.f32.mrf.mxu1  ;;  %v2869_v59 = vpop.f32.mrf.mxu0 }
 0x711   :  { %v5177_v8 = vadd.f32 %v2828_v58, %v2117_v25  ;;  %v5184_v0 = vadd.f32 %v2869_v59, %v2125_v44  ;;  %v4547_v58 = vld [vmem:[%s5515_s20 + $0xf8] sm:$0xff]   ;;  %v4557_v25 = vld [vmem:[%s5515_s20 + $0xa8] sm:$0xff]   ;;  %v4558_v44 = vld [vmem:[%s5515_s20 + $0x60] sm:$0xff]  }
 0x712   :  { %v2830_v61 = vpop.f32.mrf.mxu1  ;;  %v2871_v62 = vpop.f32.mrf.mxu0  ;;  %v4548_v59 = vld [vmem:[%s5515_s20 + $0x38] sm:$0xff]   ;;  %4256 = vmatprep.subr.bf16.mxu0 %v4547_v58 }
 0x713   :  { %v5175_v7 = vadd.f32 %v2830_v61, %v2121_v23  ;;  %v2968_v9 = vmul.f32 %v5177_v8, %v5177_v8  ;;  %v2970_v12 = vmul.f32 %v5184_v0, %v5184_v0  ;;  %v5191_v60 = vadd.f32 %v2871_v62, %v2129_v2  ;;  %v4549_v61 = vld [vmem:[%s5515_s20 + $0xb8] sm:$0xff]   ;;  %4235 = vmatpush3.bf16.msra.mxu1 %v4548_v59  ;;  %v4550_v62 = vld [vmem:[%s5515_s20 + $0x70] sm:$0xff]   ;;  %v4556_v23 = vld [vmem:[%s5515_s20 + $0x28] sm:$0xff]  }
 0x714   :  { %v2832_v63 = vpop.f32.mrf.mxu1  ;;  %v2873_v1 = vpop.f32.mrf.mxu0  ;;  %4257 = vmatpush3.bf16.msra.mxu0 %v4549_v61  ;;  %4236 = vmatprep.subr.bf16.mxu1 %v4550_v62  ;;  %v4561_v2 = vld [vmem:[%s5515_s20 + $0xa0] sm:$0xff]  }
 0x715   :  { %v2969_v53 = vmul.f32 %v5175_v7, %v5175_v7  ;;  %v2958_v11 = vadd.f32 %v5175_v7, %v5177_v8  ;;  %v2971_v19 = vmul.f32 %v5191_v60, %v5191_v60  ;;  %v4551_v63 = vld [vmem:[%s5515_s20 + $0xf0] sm:$0xff]  }
 0x716   :  { %v2833_v4 = vpop.f32.mrf.mxu1  ;;  %v2874_v5 = vpop.f32.mrf.mxu0  ;;  %v4552_v1 = vld [vmem:[%s5515_s20 + $0x30] sm:$0xff]   ;;  %4258 = vmatprep.subr.bf16.mxu0 %v4551_v63 }
 0x717   :  { %v2976_v52 = vadd.f32 %v2969_v53, %v2968_v9  ;;  %v2959_v14 = vadd.f32 %v2958_v11, %v5184_v0  ;;  %v4553_v4 = vld [vmem:[%s5515_s20 + $0xb0] sm:$0xff]   ;;  %4237 = vmatpush3.bf16.msra.mxu1 %v4552_v1  ;;  %v4554_v5 = vld [vmem:[%s5515_s20 + $0x68] sm:$0xff]   ;;  %v4559_v53 = vld [vmem:[%s5515_s20 + $0xe0] sm:$0xff]  }
 0x718   :  { %4259 = vmatpush3.bf16.msra.mxu0 %v4553_v4  ;;  %4238 = vmatprep.subr.bf16.mxu1 %v4554_v5  ;;  %v4560_v9 = vld [vmem:[%s5515_s20 + $0x20] sm:$0xff]   ;;  %v4562_v11 = vld [vmem:[%s5515_s20 + $0x58] sm:$0xff]  }
 0x719   :  { %v2977_v16 = vadd.f32 %v2976_v52, %v2970_v12  ;;  %v2960_v24 = vadd.f32 %v2959_v14, %v5191_v60  ;;  %4260 = vmatprep.subr.bf16.mxu0 %v4555_v6  ;;  %v4563_v52 = vld [vmem:[%s5515_s20 + $0xd8] sm:$0xff]  }
 0x71a   :  { %v4564_v12 = vld [vmem:[%s5515_s20 + $0x18] sm:$0xff]  }
 0x71b   :  { %v2978_v22 = vadd.f32 %v2977_v16, %v2971_v19  ;;  %4239 = vmatpush3.bf16.msra.mxu1 %v4556_v23  ;;  %v4565_v14 = vld [vmem:[%s5515_s20 + $0x98] sm:$0xff]   ;;  %v4567_v16 = vld [vmem:[%s5515_s20 + $0xd0] sm:$0xff]   ;;  %v4570_v19 = vld [vmem:[%s5515_s20 + $0x48] sm:$0xff]  }
 0x71c   :  { %4261 = vmatpush3.bf16.msra.mxu0 %v4557_v25  ;;  %4240 = vmatprep.subr.bf16.mxu1 %v4558_v44 }
 0x71d   :  { %4262 = vmatprep.subr.bf16.mxu0 %v4559_v53 }
 0x71f   :  { %4241 = vmatpush3.bf16.msra.mxu1 %v4560_v9 }
 0x720   :  { %4263 = vmatpush3.bf16.msra.mxu0 %v4561_v2  ;;  %4242 = vmatprep.subr.bf16.mxu1 %v4562_v11 }
 0x721   :  { %4264 = vmatprep.subr.bf16.mxu0 %v4563_v52 }
 0x723   :  { %4243 = vmatpush3.bf16.msra.mxu1 %v4564_v12 }
 0x724   :  { %4265 = vmatpush3.bf16.msra.mxu0 %v4565_v14 }
 0x725   :  { %4266 = vmatprep.subr.bf16.mxu0 %v4567_v16 }
 0x750   :  { %v2910_v10 = vpop.f32.mrf.mxu1  ;;  %v2951_v20 = vpop.f32.mrf.mxu0 }
 0x751   :  { %v5200_v21 = vadd.f32 %v2910_v10, %v2133_v15  ;;  %v5206_v32 = vadd.f32 %v2951_v20, %v2141_v18  ;;  %v4566_v15 = vld [vmem:[%s5515_s20 + $0x50] sm:$0xff]   ;;  %v4571_v10 = vld [vmem:[%s5515_s20 + $0xc8] sm:$0xff]  }
 0x752   :  { %v2912_v26 = vpop.f32.mrf.mxu1  ;;  %v2953_v29 = vpop.f32.mrf.mxu0  ;;  %v4568_v18 = vld [vmem:[%s5515_s20 + $0x10] sm:$0xff]   ;;  %4244 = vmatprep.subr.bf16.mxu1 %v4566_v15  ;;  %v4572_v20 = vld [vmem:[%s5515_s20 + $0x8] sm:$0xff]  }
 0x753   :  { %v2961_v30 = vadd.f32 %v2960_v24, %v5200_v21  ;;  %v2972_v31 = vmul.f32 %v5200_v21, %v5200_v21  ;;  %v5208_v33 = vadd.f32 %v2912_v26, %v2137_v28  ;;  %v2974_v49 = vmul.f32 %v5206_v32, %v5206_v32  ;;  %v4569_v28 = vld [vmem:[%s5515_s20 + $0x90] sm:$0xff]   ;;  %4245 = vmatpush3.bf16.msra.mxu1 %v4568_v18  ;;  %v4573_v24 = vld [vmem:[%s5515_s20 + $0x88] sm:$0xff]   ;;  %v4575_v26 = vld [vmem:[%s5515_s20 + $0xc0] sm:$0xff]  }
 0x754   :  { %v2914_v34 = vpop.f32.mrf.mxu1  ;;  %v2955_v35 = vpop.f32.mrf.mxu0  ;;  %v5215_v42 = vadd.f32 %v2953_v29, %v2145_v27  ;;  %4267 = vmatpush3.bf16.msra.mxu0 %v4569_v28  ;;  %4246 = vmatprep.subr.bf16.mxu1 %v4570_v19  ;;  %v4576_v27 = vld [vmem:[%s5515_s20] sm:$0xff]  }
 0x755   :  { %v2979_v36 = vadd.f32 %v2978_v22, %v2972_v31  ;;  %v2962_v37 = vadd.f32 %v2961_v30, %v5208_v33  ;;  %v2973_v38 = vmul.f32 %v5208_v33, %v5208_v33  ;;  %4268 = vmatprep.subr.bf16.mxu0 %v4571_v10  ;;  %v4574_v22 = vld [vmem:[%s5515_s20 + $0x40] sm:$0xff]   ;;  %v4578_v30 = vld [vmem:[%s5515_s20 + $0x178] sm:$0xff]  }
 0x756   :  { %v2915_v47 = vpop.f32.mrf.mxu1  ;;  %v2956_v39 = vpop.f32.mrf.mxu0  ;;  %v2975_v54 = vmul.f32 %v5215_v42, %v5215_v42  ;;  %v4577_v29 = vld [vmem:[%s5515_s20 + $0x80] sm:$0xff]   ;;  %v4579_v31 = vld [vmem:[%s5515_s20 + $0x1f8] sm:$0xff]  }
 0x757   :  { %v2963_v43 = vadd.f32 %v2962_v37, %v5206_v32  ;;  %v2980_v45 = vadd.f32 %v2979_v36, %v2973_v38  ;;  %4247 = vmatpush3.bf16.msra.mxu1 %v4572_v20 }
 0x758   :  { %4269 = vmatpush3.bf16.msra.mxu0 %v4573_v24  ;;  %4248 = vmatprep.subr.bf16.mxu1 %v4574_v22 }
 0x759   :  { %v2964_v46 = vadd.f32 %v2963_v43, %v5215_v42  ;;  %v2981_v51 = vadd.f32 %v2980_v45, %v2974_v49  ;;  %4270 = vmatprep.subr.bf16.mxu0 %v4575_v26  ;;  %v5330_v49 = vld [vmem:[%s5513_s18] sm:$0xff] }
 0x75a   :  { %v5335_v43 = vld [vmem:[%s5514_s19] sm:$0xff]  ;;  %v3015_v45 = vrot.slane %v5330_v49, %v4953_v41  ;;  %v3031_v58 = vrot.slane %v5330_v49, %v4985_v3  ;;  %v3039_v59 = vrot.slane %v5330_v49, %v5000_v17 }
 0x75b   :  { %2965 = vadd.xlane.f32.xlu1 %v2964_v46  ;;  %v2982_v56 = vadd.f32 %v2981_v51, %v2975_v54  ;;  %4249 = vmatpush3.bf16.msra.mxu1 %v4576_v27  ;;  %v3023_v46 = vrot.slane %v5330_v49, %v4962_v50  ;;  %v3011_v51 = vrot.slane %v5330_v49, %v4951_v40  ;;  %v4580_v27 = vld [vmem:[%s5515_s20 + $0x138] sm:$0xff]  }
 0x75c   :  { %4271 = vmatpush3.bf16.msra.mxu0 %v4577_v29  ;;  %4278 = vmatprep.subr.bf16.mxu1 %v4578_v30  ;;  %v3019_v54 = vrot.slane %v5330_v49, %v4960_v48  ;;  %v3073_v57 = vrot.slane %v5335_v43, %v4962_v50  ;;  %v3061_v50 = vrot.slane %v5335_v43, %v4951_v40  ;;  %v4581_v29 = vld [vmem:[%s5515_s20 + $0x1b8] sm:$0xff]   ;;  %v4582_v30 = vld [vmem:[%s5515_s20 + $0x170] sm:$0xff]  }
 0x75d   :  { %4300 = vmatprep.subr.bf16.mxu0 %v4579_v31  ;;  %v3069_v4 = vrot.slane %v5335_v43, %v4960_v48  ;;  %v3081_v40 = vrot.slane %v5335_v43, %v4985_v3  ;;  %v4583_v31 = vld [vmem:[%s5515_s20 + $0x1f0] sm:$0xff]  }
 0x75f   :  { %2983 = vadd.xlane.f32.xlu1 %v2982_v56  ;;  %v3065_v56 = vrot.slane %v5335_v43, %v4953_v41 }
 0x7e4   :  { %v2966_v34 = vpop.xlane.xlu1 %2965 }
 0x7e5   :  { %v5323_v35 = vmul.f32 0.0009765625, %v2966_v34 }
 0x7e7   :  { %v2986_v37 = vmul.f32 %v5323_v35, %v5323_v35  ;;  %v2989_v61 = vsub.f32 %v5175_v7, %v5323_v35  ;;  %v2991_v62 = vsub.f32 %v5191_v60, %v5323_v35  ;;  %v2988_v63 = vsub.f32 %v5177_v8, %v5323_v35 }
 0x7e8   :  { %v2984_v36 = vpop.xlane.xlu1 %2983  ;;  %v2990_v41 = vsub.f32 %v5184_v0, %v5323_v35  ;;  %v2993_v7 = vsub.f32 %v5208_v33, %v5323_v35  ;;  %v2995_v60 = vsub.f32 %v5215_v42, %v5323_v35  ;;  %v3089_v33 = vrot.slane %v5335_v43, %v5000_v17 }
 0x7e9   :  { %v2985_v38 = vmul.f32 0.0009765625, %v2984_v36 }
 0x7eb   :  { %v2987_v47 = vsub.f32 %v2985_v38, %v2986_v37  ;;  %v4584_v37 = vld [vmem:[%s5515_s20 + $0x130] sm:$0xff]  }
 0x7ec   :  { %v4585_v38 = vld [vmem:[%s5515_s20 + $0x1b0] sm:$0xff]  }
 0x7ed   :  { %v2996_v39 = vadd.f32 1e-05, %v2987_v47  ;;  %v4586_v47 = vld [vmem:[%s5515_s20 + $0x168] sm:$0xff]  }
 0x7ef   :  { %4618 = vrsqrt.f32 %v2996_v39  ;;  %v4587_v39 = vld [vmem:[%s5515_s20 + $0x1e8] sm:$0xff]  }
 0x7fc   :  { %v5361_v1 = vpop.eup %4618 }
 0x7fd   :  { %v2999_v5 = vmul.f32 %v5361_v1, %v2989_v61  ;;  %v3001_v8 = vmul.f32 %v5361_v1, %v2991_v62  ;;  %v2998_v0 = vmul.f32 %v5361_v1, %v2988_v63  ;;  %v3000_v6 = vmul.f32 %v5361_v1, %v2990_v41  ;;  %v4596_v63 = vld [vmem:[%s5515_s20 + $0x118] sm:$0xff]  }
 0x7fe   :  { %v3003_v23 = vmul.f32 %v5361_v1, %v2993_v7  ;;  %v3005_v48 = vmul.f32 %v5361_v1, %v2995_v60  ;;  %v2992_v61 = vsub.f32 %v5200_v21, %v5323_v35  ;;  %v2994_v62 = vsub.f32 %v5206_v32, %v5323_v35  ;;  %v4597_v41 = vld [vmem:[%s5515_s20 + $0x198] sm:$0xff]   ;;  %v4598_v21 = vld [vmem:[%s5515_s20 + $0x150] sm:$0xff]  }
 0x7ff   :  { %v3049_v25 = vmul.f32 %v3015_v45, %v2999_v5  ;;  %v3051_v42 = vmul.f32 %v3023_v46, %v3001_v8  ;;  %v3048_v44 = vmul.f32 %v3011_v51, %v2998_v0  ;;  %v3050_v53 = vmul.f32 %v3019_v54, %v3000_v6  ;;  %v4588_v45 = vld [vmem:[%s5515_s20 + $0x128] sm:$0xff]   ;;  %v4590_v51 = vld [vmem:[%s5515_s20 + $0x160] sm:$0xff]   ;;  %v4599_v32 = vld [vmem:[%s5515_s20 + $0x1d0] sm:$0xff]  }
 0x800   :  { %v3053_v9 = vmul.f32 %v3031_v58, %v3003_v23  ;;  %v3055_v2 = vmul.f32 %v3039_v59, %v3005_v48  ;;  %v4589_v46 = vld [vmem:[%s5515_s20 + $0x1a8] sm:$0xff]   ;;  %v4591_v54 = vld [vmem:[%s5515_s20 + $0x1e0] sm:$0xff]   ;;  %v4594_v58 = vld [vmem:[%s5515_s20 + $0x158] sm:$0xff]   ;;  %v3002_v35 = vmul.f32 %v5361_v1, %v2992_v61  ;;  %v3035_v7 = vrot.slane %v5330_v49, %v4994_v13 }
 0x801   :  { %v3099_v11 = vadd.f32 %v3065_v56, %v3049_v25  ;;  %v3101_v52 = vadd.f32 %v3073_v57, %v3051_v42  ;;  %v3098_v12 = vadd.f32 %v3061_v50, %v3048_v44  ;;  %v3100_v14 = vadd.f32 %v3069_v4, %v3050_v53  ;;  %v4592_v56 = vld [vmem:[%s5515_s20 + $0x120] sm:$0xff]   ;;  %v4595_v59 = vld [vmem:[%s5515_s20 + $0x1d8] sm:$0xff]   ;;  %v4600_v60 = vld [vmem:[%s5515_s20 + $0x110] sm:$0xff]  }
 0x802   :  { %v3103_v15 = vadd.f32 %v3081_v40, %v3053_v9  ;;  %v3105_v16 = vadd.f32 %v3089_v33, %v3055_v2  ;;  %v4593_v57 = vld [vmem:[%s5515_s20 + $0x1a0] sm:$0xff]   ;;  %v3027_v50 = vrot.slane %v5330_v49, %v4969_v55  ;;  %v3004_v4 = vmul.f32 %v5361_v1, %v2994_v62  ;;  %v4601_v5 = vld [vmem:[%s5515_s20 + $0x190] sm:$0xff]   ;;  %v4602_v1 = vld [vmem:[%s5515_s20 + $0x148] sm:$0xff]  }
 0x803   :  { %v3107_v18 = vmax.f32 %v3099_v11, 0.0  ;;  %v3109_v28 = vmax.f32 %v3101_v52, 0.0  ;;  %v3106_v3 = vmax.f32 %v3098_v12, 0.0  ;;  %v3108_v19 = vmax.f32 %v3100_v14, 0.0  ;;  %v4603_v49 = vld [vmem:[%s5515_s20 + $0x1c8] sm:$0xff]   ;;  %v4606_v48 = vld [vmem:[%s5515_s20 + $0x140] sm:$0xff]  }
 0x804   :  { %v3111_v10 = vmax.f32 %v3103_v15, 0.0  ;;  %v3113_v20 = vmax.f32 %v3105_v16, 0.0  ;;  %v3077_v8 = vrot.slane %v5335_v43, %v4969_v55  ;;  %v3052_v0 = vmul.f32 %v3027_v50, %v3002_v35  ;;  %v4604_v55 = vld [vmem:[%s5515_s20 + $0x108] sm:$0xff]   ;;  %v4608_v25 = vld [vmem:[%s5515_s20 + $0x100] sm:$0xff]  }
 0x805   :  { %v3115_v24 = vpack.c.bf16 %v3107_v18, %v3107_v18  ;;  %v3117_v17 = vpack.c.bf16 %v3109_v28, %v3109_v28  ;;  %v3114_v22 = vpack.c.bf16 %v3106_v3, %v3106_v3  ;;  %v3116_v26 = vpack.c.bf16 %v3108_v19, %v3108_v19  ;;  %v4605_v40 = vld [vmem:[%s5515_s20 + $0x188] sm:$0xff]   ;;  %v4609_v42 = vld [vmem:[%s5515_s20 + $0x180] sm:$0xff]  }
 0x806   :  { %v3119_v34 = vpack.c.bf16 %v3111_v10, %v3111_v10  ;;  %v3121_v36 = vpack.c.bf16 %v3113_v20, %v3113_v20  ;;  %v3054_v6 = vmul.f32 %v3035_v7, %v3004_v4  ;;  %v3085_v23 = vrot.slane %v5335_v43, %v4994_v13  ;;  %v4607_v13 = vld [vmem:[%s5515_s20 + $0x1c0] sm:$0xff]  }
 0x807   :  { %3673 = vmatprep.mubr.bf16.mxu1 %v3115_v24  ;;  %3713 = vmatprep.mubr.bf16.mxu0 %v3117_v17  ;;  %v3102_v43 = vadd.f32 %v3077_v8, %v3052_v0 }
 0x808   :  { %3674 = vmatmul.mubr.bf16.vlgmr.msra.gmra.mxu1 %v3114_v22  ;;  %3714 = vmatmul.mubr.bf16.vlgmr.msra.gmra.mxu0 %v3116_v26  ;;  %v3104_v33 = vadd.f32 %v3085_v23, %v3054_v6 }
 0x809   :  { %4279 = vmatpush3.bf16.msra.mxu1 %v4580_v27  ;;  %4301 = vmatpush3.bf16.msra.mxu0 %v4581_v29  ;;  %v3110_v44 = vmax.f32 %v3102_v43, 0.0 }
 0x80a   :  { %3753 = vmatprep.mubr.bf16.mxu1 %v3119_v34  ;;  %3793 = vmatprep.mubr.bf16.mxu0 %v3121_v36  ;;  %v3112_v53 = vmax.f32 %v3104_v33, 0.0 }
 0x80b   :  { %4280 = vmatprep.subr.bf16.mxu1 %v4582_v30  ;;  %4302 = vmatprep.subr.bf16.mxu0 %v4583_v31  ;;  %v3118_v9 = vpack.c.bf16 %v3110_v44, %v3110_v44 }
 0x80c   :  { %v3120_v2 = vpack.c.bf16 %v3112_v53, %v3112_v53 }
 0x80d   :  { %4281 = vmatpush3.bf16.msra.mxu1 %v4584_v37  ;;  %4303 = vmatpush3.bf16.msra.mxu0 %v4585_v38 }
 0x80e   :  { %4282 = vmatprep.subr.bf16.mxu1 %v4586_v47  ;;  %4304 = vmatprep.subr.bf16.mxu0 %v4587_v39 }
 0x811   :  { %4283 = vmatpush3.bf16.msra.mxu1 %v4588_v45  ;;  %4305 = vmatpush3.bf16.msra.mxu0 %v4589_v46 }
 0x812   :  { %4284 = vmatprep.subr.bf16.mxu1 %v4590_v51  ;;  %4306 = vmatprep.subr.bf16.mxu0 %v4591_v54 }
 0x815   :  { %4285 = vmatpush3.bf16.msra.mxu1 %v4592_v56  ;;  %4307 = vmatpush3.bf16.msra.mxu0 %v4593_v57 }
 0x816   :  { %4286 = vmatprep.subr.bf16.mxu1 %v4594_v58  ;;  %4308 = vmatprep.subr.bf16.mxu0 %v4595_v59 }
 0x819   :  { %4287 = vmatpush3.bf16.msra.mxu1 %v4596_v63  ;;  %4309 = vmatpush3.bf16.msra.mxu0 %v4597_v41 }
 0x81a   :  { %4288 = vmatprep.subr.bf16.mxu1 %v4598_v21  ;;  %4310 = vmatprep.subr.bf16.mxu0 %v4599_v32 }
 0x81d   :  { %4289 = vmatpush3.bf16.msra.mxu1 %v4600_v60  ;;  %4311 = vmatpush3.bf16.msra.mxu0 %v4601_v5 }
 0x81e   :  { %4290 = vmatprep.subr.bf16.mxu1 %v4602_v1  ;;  %4312 = vmatprep.subr.bf16.mxu0 %v4603_v49 }
 0x821   :  { %4291 = vmatpush3.bf16.msra.mxu1 %v4604_v55  ;;  %4313 = vmatpush3.bf16.msra.mxu0 %v4605_v40 }
 0x822   :  { %4292 = vmatprep.subr.bf16.mxu1 %v4606_v48  ;;  %4314 = vmatprep.subr.bf16.mxu0 %v4607_v13 }
 0x825   :  { %4293 = vmatpush3.bf16.msra.mxu1 %v4608_v25  ;;  %4315 = vmatpush3.bf16.msra.mxu0 %v4609_v42 }
 0x828   :  { %3754 = vmatmul.mubr.bf16.vlgmr.msra.gmra.mxu1 %v3118_v9  ;;  %3794 = vmatmul.mubr.bf16.vlgmr.msra.gmra.mxu0 %v3120_v2 }
 0x829   :  { %4671 = shalt.err (!%p4668_p0)
}
 0x82a   :  { %3822 = dma.vmem_to_hbm [thread:$0]  %s3820_s16, 128, %s5518_s23, [#allocation9]   ;;  %v4147_v19 = vld [vmem:[%s5516_s21] ss:$0 sm:$0xff] }
 0x82b   :  { %s4717_s23 = smov [#allocation7]  }
 0x82c   :  { %s3809_s2 = sshll.u32 %s4717_s23, 4  ;;  %s3810_s2 = int_to_ptr.vmem [resolvable:$true] %s3809_s2 }
 0x82d   :  { %s4680_s21 = scalar_lea.vmem %s3810_s2, 128  ;;  %p4685_p2 = scmp.lt.s32.totalorder %s3810_s2, %s3810_s2 }
 0x82e   :  { %p4681_p1 = scmp.ne.s32.totalorder %s3810_s2, %s4680_s21  ;;  %p4686_p3 = scmp.lt.s32.totalorder %s4680_s21, %s4680_s21 }
 0x830   :  { %p4687_p4 = por %p4686_p3, %p4685_p2 }
 0x832   :  { %p4688_p5 = pnand %p4687_p4, %p4681_p1 }
 0x8c8   :  { %v4250_v11 = vpop.f32.mrf.mxu1  ;;  %v4272_v52 = vpop.f32.mrf.mxu0 }
 0x8ca   :  { %v4251_v12 = vpop.f32.mrf.mxu1  ;;  %v4273_v14 = vpop.f32.mrf.mxu0 }
 0x8cb   :  { %v4252_v3 = vadd.f32 %v4251_v12, %v4250_v11  ;;  %v4274_v17 = vadd.f32 %v4273_v14, %v4272_v52 }
 0x8cc   :  { %v4253_v15 = vpop.f32.mrf.mxu1  ;;  %v4275_v16 = vpop.f32.mrf.mxu0 }
 0x8cd   :  { %v3676_v10 = vadd.f32 %v4252_v3, %v4147_v19 }
 0x8ce   :  { %v4254_v18 = vpop.f32.mrf.mxu1  ;;  %v4276_v28 = vpop.f32.mrf.mxu0 }
 0x8cf   :  { %v3716_v27 = vadd.f32 %v4274_v17, %v3676_v10 }
 0x8e8   :  { %v4294_v20 = vpop.f32.mrf.mxu1  ;;  %v4316_v24 = vpop.f32.mrf.mxu0 }
 0x8ea   :  { %v4295_v22 = vpop.f32.mrf.mxu1  ;;  %v4317_v26 = vpop.f32.mrf.mxu0 }
 0x8eb   :  { %v4296_v29 = vadd.f32 %v4295_v22, %v4294_v20  ;;  %v4318_v36 = vadd.f32 %v4317_v26, %v4316_v24 }
 0x8ec   :  { %v4297_v30 = vpop.f32.mrf.mxu1  ;;  %v4319_v31 = vpop.f32.mrf.mxu0 }
 0x8ed   :  { %v3756_v34 = vadd.f32 %v4296_v29, %v3716_v27 }
 0x8ee   :  { %v4298_v37 = vpop.f32.mrf.mxu1  ;;  %v4320_v38 = vpop.f32.mrf.mxu0 }
 0x8ef   :  { %v3796_v47 = vadd.f32 %v4318_v36, %v3756_v34 }
 0x8f1   :  { %3801 = vst.msk [vmem:[#allocation7] sm:$0xff] %vm339_vm0, %v3796_v47 }
 0x8f2   :  { %4691 = shalt.err (!%p4688_p5)
}
 0x8f3   :  { %3812 = dma.vmem_to_hbm [thread:$0]  %s3810_s2, 128, %s5517_s22, [#allocation4]  }
 0x8f4   :  { %4704 = dma.done.wait [#allocation4], 128  }
 0x8f5   :  { %4705 = vsyncadd [#allocation4], 4294967168 }
 0x8f6   :  { %4706 = dma.done.wait [#allocation9], 128  }
 0x8f7   :  { %4707 = vsyncadd [#allocation9], 4294967168 }
 0x8f8   :  { %3829 = vsyncpa [#allocation3], 1 }
 0x8f9   :  { %3830 = vsyncpa [#allocation6], 1 }
 0x8fa   :  { %3831 = vsyncpa [#allocation4], 1 }
 0x8fb   :  { %3832 = vsyncpa [#allocation9], 1 }

</bundles_post_ra>
